<compile_context>
chip_gen: v6e
topology: v6e:2x2x1
jax: 0.10.0
libtpu: 0.0.40
codegen_flags: <defaults>
</compile_context>

<pallas_src>
import jax
import jax.numpy as jnp
import numpy as np
from jax import lax
from jax.experimental import pallas as pl
from jax.experimental.pallas import tpu as pltpu

EPS = 1e-5


def se_basic_block_kernel(x_ref, w1_ref, s1_ref, b1_ref,
                          w2_ref, s2_ref, b2_ref,
                          fc1w_ref, fc1b_ref, fc2w_ref, fc2b_ref,
                          out_ref, lhs_ref):
    """One image per grid step.  x_ref/out_ref: (1, H, W*C) f32, lane-dense.

    w*_ref:   (3*WC, WC) bf16 fused row matrices (kh taps stacked along K,
              kw taps + width zero-padding folded into the matrix).
    s*/b*_ref:(1, WC) f32 eval-mode BN folded scale/bias, lane-tiled.
    fc1w_ref: (Chid, WC) f32 = tile_W(fc1_w) / W   (W-average folded in).
    fc1b_ref: (Chid, 1)  f32.
    fc2w_ref: (Chid, WC) f32 = tile_W(fc2_w.T)     (lane broadcast folded in).
    fc2b_ref: (1, WC)    f32 lane-tiled.
    lhs_ref:  (H, 3*WC) bf16 VMEM scratch for the fused conv lhs.
    """
    H, WC = out_ref.shape[1], out_ref.shape[2]

    x2 = x_ref[0]                                         # (H, WC) f32
    rows = lax.broadcasted_iota(jnp.int32, (H, WC), 0)

    def conv3x3(v_f32, w_ref):
        """3x3 stride-1 SAME conv as a single (H, 3*WC) @ (3*WC, WC) matmul."""
        zero = jnp.zeros_like(v_f32)
        # Row h-1 (zero at the top) / row h+1 (zero at the bottom), built with
        # XLU rolls + boundary masks instead of concatenate copies.
        up = jnp.where(rows >= 1, pltpu.roll(v_f32, shift=1, axis=0), zero)
        down = jnp.where(rows <= H - 2,
                         pltpu.roll(v_f32, shift=H - 1, axis=0), zero)
        # Aligned lane-slice stores into the fused lhs scratch (bf16 operands).
        lhs_ref[:, 0:WC] = up.astype(jnp.bfloat16)
        lhs_ref[:, WC:2 * WC] = v_f32.astype(jnp.bfloat16)
        lhs_ref[:, 2 * WC:3 * WC] = down.astype(jnp.bfloat16)
        return jnp.dot(lhs_ref[...], w_ref[...],
                       preferred_element_type=jnp.float32)  # (H, WC) f32

    # conv1 -> ReLU -> bn1   (this module applies ReLU BEFORE bn1)
    h1 = jnp.maximum(conv3x3(x2, w1_ref), 0.0) * s1_ref[...] + b1_ref[...]

    # conv2 -> bn2
    h2 = conv3x3(h1, w2_ref) * s2_ref[...] + b2_ref[...]

    # --- SE: global avg pool -> fc1 -> ReLU -> fc2 -> sigmoid -> scale ---
    # Mean over H (sublane reduce); the mean over W is folded into fc1w_ref.
    rm = jnp.mean(h2, axis=0, keepdims=True)              # (1, WC)
    z = jnp.sum(fc1w_ref[...] * rm, axis=1, keepdims=True) + fc1b_ref[...]
    z = jnp.maximum(z, 0.0)                                # (Chid, 1)
    se_lanes = jax.nn.sigmoid(
        jnp.sum(z * fc2w_ref[...], axis=0, keepdims=True) + fc2b_ref[...])  # (1, WC)

    # --- SE scale, residual add (downsample=None), final ReLU ---
    out_ref[0] = jnp.maximum(h2 * se_lanes + x2, 0.0).astype(out_ref.dtype)


def _conv3x3_fused_row_weight(w_oihw, width):
    """PyTorch (Cout, Cin, 3, 3) conv weight -> (3*width*Cin, width*Cout) bf16.

    Block kh, entry [w_in*Cin + ci, w_out*Cout + co] == w[co, ci, kh, w_in-w_out+1]
    when |w_in - w_out| <= 1, else 0.  Right-multiplying the lhs
    [row_{h-1} | row_h | row_{h+1}]  (each laid out as width*Cin lanes) applies
    the full 3x3 SAME conv for output row h as one MXU matmul.
    """
    cout, cin = w_oihw.shape[0], w_oihw.shape[1]
    k = jnp.transpose(w_oihw, (2, 3, 1, 0)).astype(jnp.float32)  # (kh, kw, Cin, Cout)
    w_in = jnp.arange(width)[:, None]
    w_out = jnp.arange(width)[None, :]
    kw = w_in - w_out + 1                                        # (width, width)
    valid = ((kw >= 0) & (kw <= 2)).astype(jnp.float32)
    kw_c = jnp.clip(kw, 0, 2)
    mats = []
    for kh in range(3):
        blocks = k[kh][kw_c] * valid[:, :, None, None]           # (W, W, Cin, Cout)
        mats.append(jnp.transpose(blocks, (0, 2, 1, 3))
                    .reshape(width * cin, width * cout))
    return jnp.concatenate(mats, axis=0).astype(jnp.bfloat16)    # (3*WC, WC)


def _fold_bn_lanes(gamma, beta, mean, var, width):
    """Eval-mode BN folded into per-channel scale/bias, tiled W times along lanes."""
    # TODO(synk): training-mode (batch-statistic) BatchNorm is not implemented.
    scale = gamma / jnp.sqrt(var + EPS)
    bias = beta - mean * scale
    return (jnp.tile(scale, width).reshape(1, -1),
            jnp.tile(bias, width).reshape(1, -1))


def prepare_se_basic_block(p, width):
    """One-time weight preparation (hoisted out of the per-call path)."""
    C = p["conv1_w"].shape[0]
    chid = p["fc1_w"].shape[0]
    WC = width * C

    # The (W*C)^2 row-weight formulation must fit VMEM (both convs, bf16).
    # TODO(synk): switch to im2col (K = 9*C) or W-tiling with a 1-col halo
    # once W*C grows past ~1k (v7x has 64 MiB VMEM, v5e a 16 MiB scoped default).
    assert 2 * 3 * WC * WC * 2 <= 8 * 1024 * 1024, \
        "row-weight conv formulation too large for VMEM at this W*C"

    s1, b1 = _fold_bn_lanes(p["bn1_g"], p["bn1_b"], p["bn1_m"], p["bn1_v"], width)
    s2, b2 = _fold_bn_lanes(p["bn2_g"], p["bn2_b"], p["bn2_m"], p["bn2_v"], width)

    return {
        "w1": _conv3x3_fused_row_weight(p["conv1_w"], width),   # (3*WC, WC) bf16
        "w2": _conv3x3_fused_row_weight(p["conv2_w"], width),
        "s1": s1, "b1": b1, "s2": s2, "b2": b2,                 # (1, WC) f32
        # SE: fold the W-average into fc1 and the lane broadcast into fc2.
        # nn.Linear stores weight as (out, in); y = x @ W.T + b.
        "fc1w": jnp.tile(p["fc1_w"], (1, width)) / float(width),    # (Chid, WC)
        "fc1b": p["fc1_b"].reshape(chid, 1),                        # (Chid, 1)
        "fc2w": jnp.tile(jnp.transpose(p["fc2_w"]), (1, width)),    # (Chid, WC)
        "fc2b": jnp.tile(p["fc2_b"], width).reshape(1, WC),         # (1, WC)
    }


def se_basic_block(x_nchw, prepped):
    """x_nchw: (B, C, H, W) float32.  prepped: output of prepare_se_basic_block."""
    B, C, H, W = x_nchw.shape
    WC = W * C
    chid = prepped["fc1b"].shape[0]
    assert prepped["w1"].shape == (3 * WC, WC), "prepared weights / input mismatch"

    # NCHW -> NHWC -> fold W into the lane axis: (B, H, W*C).  No jnp.pad.
    x = jnp.transpose(x_nchw, (0, 2, 3, 1)).astype(jnp.float32).reshape(B, H, WC)

    out = pl.pallas_call(
        se_basic_block_kernel,
        out_shape=jax.ShapeDtypeStruct((B, H, WC), jnp.float32),
        grid_spec=pltpu.PrefetchScalarGridSpec(
            num_scalar_prefetch=0,
            grid=(B,),                                  # one image per grid step
            in_specs=[
                pl.BlockSpec((1, H, WC), lambda b: (b, 0, 0)),      # x
                pl.BlockSpec((3 * WC, WC), lambda b: (0, 0)),       # conv1 weights
                pl.BlockSpec((1, WC), lambda b: (0, 0)),            # bn1 scale
                pl.BlockSpec((1, WC), lambda b: (0, 0)),            # bn1 bias
                pl.BlockSpec((3 * WC, WC), lambda b: (0, 0)),       # conv2 weights
                pl.BlockSpec((1, WC), lambda b: (0, 0)),            # bn2 scale
                pl.BlockSpec((1, WC), lambda b: (0, 0)),            # bn2 bias
                pl.BlockSpec((chid, WC), lambda b: (0, 0)),         # fc1 weight (folded)
                pl.BlockSpec((chid, 1), lambda b: (0, 0)),          # fc1 bias
                pl.BlockSpec((chid, WC), lambda b: (0, 0)),         # fc2 weight (tiled)
                pl.BlockSpec((1, WC), lambda b: (0, 0)),            # fc2 bias (tiled)
            ],
            out_specs=pl.BlockSpec((1, H, WC), lambda b: (b, 0, 0)),
            scratch_shapes=[pltpu.VMEM((H, 3 * WC), jnp.bfloat16)],  # fused conv lhs
        ),
        compiler_params=pltpu.CompilerParams(
            dimension_semantics=("parallel",)),          # both TCs on v7x
    )(x, prepped["w1"], prepped["s1"], prepped["b1"],
      prepped["w2"], prepped["s2"], prepped["b2"],
      prepped["fc1w"], prepped["fc1b"], prepped["fc2w"], prepped["fc2b"])

    return jnp.transpose(out.reshape(B, H, W, C), (0, 3, 1, 2))  # back to NCHW


def se_basic_block_ref(x_nchw, p, matmul_dtype=jnp.float32):
    """Pure-JAX reference (eval-mode BN).  matmul_dtype=bfloat16 rounds the conv
    operands exactly as the kernel's bf16 MXU path does (f32 accumulate)."""
    x = jnp.transpose(x_nchw, (0, 2, 3, 1)).astype(jnp.float32)

    def conv(h, w_oihw):
        w = jnp.transpose(w_oihw, (2, 3, 1, 0))       # HWIO
        return lax.conv_general_dilated(
            h.astype(matmul_dtype), w.astype(matmul_dtype), (1, 1), "SAME",
            dimension_numbers=("NHWC", "HWIO", "NHWC"),
            preferred_element_type=jnp.float32)

    def bn(h, g, b, m, v):
        return (h - m) / jnp.sqrt(v + EPS) * g + b

    out = conv(x, p["conv1_w"])
    out = jnp.maximum(out, 0.0)
    out = bn(out, p["bn1_g"], p["bn1_b"], p["bn1_m"], p["bn1_v"])
    out = conv(out, p["conv2_w"])
    out = bn(out, p["bn2_g"], p["bn2_b"], p["bn2_m"], p["bn2_v"])
    y = jnp.mean(out, axis=(1, 2))                                 # (B, C)
    y = jnp.maximum(y @ p["fc1_w"].T + p["fc1_b"], 0.0)
    y = jax.nn.sigmoid(y @ p["fc2_w"].T + p["fc2_b"])
    out = out * y[:, None, None, :]
    out = jnp.maximum(out + x, 0.0)
    return jnp.transpose(out, (0, 3, 1, 2))


def make_params(key, planes, reduction=8):
    ks = jax.random.split(key, 10)
    chid = planes // reduction
    scale = 0.1
    return {
        "conv1_w": scale * jax.random.normal(ks[0], (planes, planes, 3, 3), jnp.float32),
        "bn1_g": 1.0 + 0.1 * jax.random.normal(ks[1], (planes,), jnp.float32),
        "bn1_b": 0.1 * jax.random.normal(ks[2], (planes,), jnp.float32),
        "bn1_m": 0.1 * jax.random.normal(ks[3], (planes,), jnp.float32),
        "bn1_v": 1.0 + 0.1 * jax.random.uniform(ks[4], (planes,), jnp.float32),
        "conv2_w": scale * jax.random.normal(ks[5], (planes, planes, 3, 3), jnp.float32),
        "bn2_g": 1.0 + 0.1 * jax.random.normal(ks[6], (planes,), jnp.float32),
        "bn2_b": 0.1 * jax.random.normal(ks[7], (planes,), jnp.float32),
        "bn2_m": 0.1 * jax.random.normal(ks[8], (planes,), jnp.float32),
        "bn2_v": 1.0 + 0.1 * jax.random.uniform(ks[9], (planes,), jnp.float32),
        "fc1_w": scale * jax.random.normal(jax.random.fold_in(key, 100), (chid, planes), jnp.float32),
        "fc1_b": scale * jax.random.normal(jax.random.fold_in(key, 101), (chid,), jnp.float32),
        "fc2_w": scale * jax.random.normal(jax.random.fold_in(key, 102), (planes, chid), jnp.float32),
        "fc2_b": scale * jax.random.normal(jax.random.fold_in(key, 103), (planes,), jnp.float32),
    }


if __name__ == "__main__":
    key = jax.random.PRNGKey(0)
    B, C, H, W = 2, 16, 16, 16          # inplanes == planes == 16, stride=1, W*C = 256
    x = jax.random.normal(jax.random.fold_in(key, 1), (B, C, H, W), jnp.float32)
    params = make_params(jax.random.fold_in(key, 2), C, reduction=8)

    # One-time weight preparation (hoisted out of the per-forward path).
    prepped = jax.block_until_ready(prepare_se_basic_block(params, W))

    out = se_basic_block(x, prepped)
    out = jax.block_until_ready(out)

    # Compare against the reference evaluated at the kernel's MXU precision
    # (bf16 conv operands, f32 accumulation / elementwise / SE path).
    ref = se_basic_block_ref(x, params, matmul_dtype=jnp.bfloat16)
    np.testing.assert_allclose(np.asarray(out), np.asarray(ref),
                               rtol=5e-3, atol=5e-3)
    print("KERNEL_OK")
</pallas_src>

<mosaic_0001>
module attributes {stable_mosaic.version = 11 : i64} {
  func.func @se_basic_block_kernel(%arg0: i32, %arg1: memref<1x16x256xf32, #tpu.memory_space<vmem>>, %arg2: memref<768x256xbf16, #tpu.memory_space<vmem>>, %arg3: memref<1x256xf32, #tpu.memory_space<vmem>>, %arg4: memref<1x256xf32, #tpu.memory_space<vmem>>, %arg5: memref<768x256xbf16, #tpu.memory_space<vmem>>, %arg6: memref<1x256xf32, #tpu.memory_space<vmem>>, %arg7: memref<1x256xf32, #tpu.memory_space<vmem>>, %arg8: memref<2x256xf32, #tpu.memory_space<vmem>>, %arg9: memref<2x1xf32, #tpu.memory_space<vmem>>, %arg10: memref<2x256xf32, #tpu.memory_space<vmem>>, %arg11: memref<1x256xf32, #tpu.memory_space<vmem>>, %arg12: memref<1x16x256xf32, #tpu.memory_space<vmem>>, %arg13: memref<16x768xbf16, #tpu.memory_space<vmem>>) attributes {dimension_semantics = [#tpu.dimension_semantics<parallel>], iteration_bounds = array<i64: 2>, scalar_prefetch = 0 : i64, scratch_operands = 1 : i64, tpu.core_type = #tpu.core_type<tc>, window_params = [{transform_indices = @transform_0, window_bounds = array<i64: 1, 16, 256>}, {pipeline_mode = #tpu.pipeline_mode<synchronous>, transform_indices = @transform_1, window_bounds = array<i64: 768, 256>}, {pipeline_mode = #tpu.pipeline_mode<synchronous>, transform_indices = @transform_2, window_bounds = array<i64: 1, 256>}, {pipeline_mode = #tpu.pipeline_mode<synchronous>, transform_indices = @transform_3, window_bounds = array<i64: 1, 256>}, {pipeline_mode = #tpu.pipeline_mode<synchronous>, transform_indices = @transform_4, window_bounds = array<i64: 768, 256>}, {pipeline_mode = #tpu.pipeline_mode<synchronous>, transform_indices = @transform_5, window_bounds = array<i64: 1, 256>}, {pipeline_mode = #tpu.pipeline_mode<synchronous>, transform_indices = @transform_6, window_bounds = array<i64: 1, 256>}, {pipeline_mode = #tpu.pipeline_mode<synchronous>, transform_indices = @transform_7, window_bounds = array<i64: 2, 256>}, {pipeline_mode = #tpu.pipeline_mode<synchronous>, transform_indices = @transform_8, window_bounds = array<i64: 2, 1>}, {pipeline_mode = #tpu.pipeline_mode<synchronous>, transform_indices = @transform_9, window_bounds = array<i64: 2, 256>}, {pipeline_mode = #tpu.pipeline_mode<synchronous>, transform_indices = @transform_10, window_bounds = array<i64: 1, 256>}, {transform_indices = @transform_11, window_bounds = array<i64: 1, 16, 256>}]} {
    %c0 = arith.constant 0 : index
    %c0_0 = arith.constant 0 : index
    %c0_1 = arith.constant 0 : index
    %0 = vector.load %arg1[%c0, %c0_0, %c0_1] : memref<1x16x256xf32, #tpu.memory_space<vmem>>, vector<1x16x256xf32>
    %1 = vector.shape_cast %0 : vector<1x16x256xf32> to vector<16x256xf32>
    %2 = tpu.iota {dimensions = array<i32: 0>} : vector<16x256xi32>
    %cst = arith.constant 0.000000e+00 : f32
    %3 = vector.broadcast %cst : f32 to vector<16x256xf32>
    %c1_i32 = arith.constant 1 : i32
    %4 = vector.broadcast %c1_i32 : i32 to vector<16x256xi32>
    %5 = arith.cmpi sge, %2, %4 : vector<16x256xi32>
    %c1_i32_2 = arith.constant 1 : i32
    %6 = tpu.dynamic_rotate %1 by %c1_i32_2 dim 0 : vector<16x256xf32>, i32 -> vector<16x256xf32>
    %7 = arith.select %5, %6, %3 : vector<16x256xi1>, vector<16x256xf32>
    %c14_i32 = arith.constant 14 : i32
    %8 = vector.broadcast %c14_i32 : i32 to vector<16x256xi32>
    %9 = arith.cmpi sle, %2, %8 : vector<16x256xi32>
    %c15_i32 = arith.constant 15 : i32
    %10 = tpu.dynamic_rotate %1 by %c15_i32 dim 0 : vector<16x256xf32>, i32 -> vector<16x256xf32>
    %11 = arith.select %9, %10, %3 : vector<16x256xi1>, vector<16x256xf32>
    %12 = arith.truncf %7 : vector<16x256xf32> to vector<16x256xbf16>
    %c0_3 = arith.constant 0 : index
    %c0_4 = arith.constant 0 : index
    %13 = vector.load %arg13[%c0_3, %c0_4] : memref<16x768xbf16, #tpu.memory_space<vmem>>, vector<16x256xbf16>
    tpu.vector_store %arg13[%c0_3, %c0_4], %12 {strides = array<i32>} : memref<16x768xbf16, #tpu.memory_space<vmem>>, vector<16x256xbf16>,
    %14 = arith.truncf %1 : vector<16x256xf32> to vector<16x256xbf16>
    %c0_5 = arith.constant 0 : index
    %c256 = arith.constant 256 : index
    %15 = vector.load %arg13[%c0_5, %c256] : memref<16x768xbf16, #tpu.memory_space<vmem>>, vector<16x256xbf16>
    tpu.vector_store %arg13[%c0_5, %c256], %14 {strides = array<i32>} : memref<16x768xbf16, #tpu.memory_space<vmem>>, vector<16x256xbf16>,
    %16 = arith.truncf %11 : vector<16x256xf32> to vector<16x256xbf16>
    %c0_6 = arith.constant 0 : index
    %c512 = arith.constant 512 : index
    %17 = vector.load %arg13[%c0_6, %c512] : memref<16x768xbf16, #tpu.memory_space<vmem>>, vector<16x256xbf16>
    tpu.vector_store %arg13[%c0_6, %c512], %16 {strides = array<i32>} : memref<16x768xbf16, #tpu.memory_space<vmem>>, vector<16x256xbf16>,
    %c0_7 = arith.constant 0 : index
    %c0_8 = arith.constant 0 : index
    %18 = vector.load %arg13[%c0_7, %c0_8] : memref<16x768xbf16, #tpu.memory_space<vmem>>, vector<16x768xbf16>
    %c0_9 = arith.constant 0 : index
    %c0_10 = arith.constant 0 : index
    %19 = vector.load %arg2[%c0_9, %c0_10] : memref<768x256xbf16, #tpu.memory_space<vmem>>, vector<768x256xbf16>
    %cst_11 = arith.constant dense<0.000000e+00> : vector<16x256xf32>
    %20 = tpu.matmul %18, %19, %cst_11 {dimension_numbers = #tpu.dot_dimension_numbers<[1], [0], [0], [1], [0, 0, 1, 1], [], []>} : vector<16x768xbf16>, vector<768x256xbf16>, vector<16x256xf32> -> vector<16x256xf32>
    %cst_12 = arith.constant 0.000000e+00 : f32
    %21 = vector.broadcast %cst_12 : f32 to vector<16x256xf32>
    %22 = arith.maximumf %20, %21 : vector<16x256xf32>
    %c0_13 = arith.constant 0 : index
    %c0_14 = arith.constant 0 : index
    %23 = vector.load %arg3[%c0_13, %c0_14] : memref<1x256xf32, #tpu.memory_space<vmem>>, vector<1x256xf32>
    %24 = vector.broadcast %23 : vector<1x256xf32> to vector<16x256xf32>
    %25 = arith.mulf %22, %24 : vector<16x256xf32>
    %c0_15 = arith.constant 0 : index
    %c0_16 = arith.constant 0 : index
    %26 = vector.load %arg4[%c0_15, %c0_16] : memref<1x256xf32, #tpu.memory_space<vmem>>, vector<1x256xf32>
    %27 = vector.broadcast %26 : vector<1x256xf32> to vector<16x256xf32>
    %28 = arith.addf %25, %27 : vector<16x256xf32>
    %cst_17 = arith.constant 0.000000e+00 : f32
    %29 = vector.broadcast %cst_17 : f32 to vector<16x256xf32>
    %c1_i32_18 = arith.constant 1 : i32
    %30 = vector.broadcast %c1_i32_18 : i32 to vector<16x256xi32>
    %31 = arith.cmpi sge, %2, %30 : vector<16x256xi32>
    %c1_i32_19 = arith.constant 1 : i32
    %32 = tpu.dynamic_rotate %28 by %c1_i32_19 dim 0 : vector<16x256xf32>, i32 -> vector<16x256xf32>
    %33 = arith.select %31, %32, %29 : vector<16x256xi1>, vector<16x256xf32>
    %c14_i32_20 = arith.constant 14 : i32
    %34 = vector.broadcast %c14_i32_20 : i32 to vector<16x256xi32>
    %35 = arith.cmpi sle, %2, %34 : vector<16x256xi32>
    %c15_i32_21 = arith.constant 15 : i32
    %36 = tpu.dynamic_rotate %28 by %c15_i32_21 dim 0 : vector<16x256xf32>, i32 -> vector<16x256xf32>
    %37 = arith.select %35, %36, %29 : vector<16x256xi1>, vector<16x256xf32>
    %38 = arith.truncf %33 : vector<16x256xf32> to vector<16x256xbf16>
    %c0_22 = arith.constant 0 : index
    %c0_23 = arith.constant 0 : index
    %39 = vector.load %arg13[%c0_22, %c0_23] : memref<16x768xbf16, #tpu.memory_space<vmem>>, vector<16x256xbf16>
    tpu.vector_store %arg13[%c0_22, %c0_23], %38 {strides = array<i32>} : memref<16x768xbf16, #tpu.memory_space<vmem>>, vector<16x256xbf16>,
    %40 = arith.truncf %28 : vector<16x256xf32> to vector<16x256xbf16>
    %c0_24 = arith.constant 0 : index
    %c256_25 = arith.constant 256 : index
    %41 = vector.load %arg13[%c0_24, %c256_25] : memref<16x768xbf16, #tpu.memory_space<vmem>>, vector<16x256xbf16>
    tpu.vector_store %arg13[%c0_24, %c256_25], %40 {strides = array<i32>} : memref<16x768xbf16, #tpu.memory_space<vmem>>, vector<16x256xbf16>,
    %42 = arith.truncf %37 : vector<16x256xf32> to vector<16x256xbf16>
    %c0_26 = arith.constant 0 : index
    %c512_27 = arith.constant 512 : index
    %43 = vector.load %arg13[%c0_26, %c512_27] : memref<16x768xbf16, #tpu.memory_space<vmem>>, vector<16x256xbf16>
    tpu.vector_store %arg13[%c0_26, %c512_27], %42 {strides = array<i32>} : memref<16x768xbf16, #tpu.memory_space<vmem>>, vector<16x256xbf16>,
    %c0_28 = arith.constant 0 : index
    %c0_29 = arith.constant 0 : index
    %44 = vector.load %arg13[%c0_28, %c0_29] : memref<16x768xbf16, #tpu.memory_space<vmem>>, vector<16x768xbf16>
    %c0_30 = arith.constant 0 : index
    %c0_31 = arith.constant 0 : index
    %45 = vector.load %arg5[%c0_30, %c0_31] : memref<768x256xbf16, #tpu.memory_space<vmem>>, vector<768x256xbf16>
    %cst_32 = arith.constant dense<0.000000e+00> : vector<16x256xf32>
    %46 = tpu.matmul %44, %45, %cst_32 {dimension_numbers = #tpu.dot_dimension_numbers<[1], [0], [0], [1], [0, 0, 1, 1], [], []>} : vector<16x768xbf16>, vector<768x256xbf16>, vector<16x256xf32> -> vector<16x256xf32>
    %c0_33 = arith.constant 0 : index
    %c0_34 = arith.constant 0 : index
    %47 = vector.load %arg6[%c0_33, %c0_34] : memref<1x256xf32, #tpu.memory_space<vmem>>, vector<1x256xf32>
    %48 = vector.broadcast %47 : vector<1x256xf32> to vector<16x256xf32>
    %49 = arith.mulf %46, %48 : vector<16x256xf32>
    %c0_35 = arith.constant 0 : index
    %c0_36 = arith.constant 0 : index
    %50 = vector.load %arg7[%c0_35, %c0_36] : memref<1x256xf32, #tpu.memory_space<vmem>>, vector<1x256xf32>
    %51 = vector.broadcast %50 : vector<1x256xf32> to vector<16x256xf32>
    %52 = arith.addf %49, %51 : vector<16x256xf32>
    %cst_37 = arith.constant dense<0.000000e+00> : vector<256xf32>
    %53 = vector.multi_reduction <add>, %52, %cst_37 [0] : vector<16x256xf32> to vector<256xf32>
    %54 = vector.shape_cast %53 : vector<256xf32> to vector<1x256xf32>
    %cst_38 = arith.constant 1.600000e+01 : f32
    %55 = vector.broadcast %cst_38 : f32 to vector<1x256xf32>
    %56 = arith.divf %54, %55 : vector<1x256xf32>
    %c0_39 = arith.constant 0 : index
    %c0_40 = arith.constant 0 : index
    %57 = vector.load %arg8[%c0_39, %c0_40] : memref<2x256xf32, #tpu.memory_space<vmem>>, vector<2x256xf32>
    %58 = vector.broadcast %56 : vector<1x256xf32> to vector<2x256xf32>
    %59 = arith.mulf %57, %58 : vector<2x256xf32>
    %cst_41 = arith.constant dense<0.000000e+00> : vector<2xf32>
    %60 = vector.multi_reduction <add>, %59, %cst_41 [1] : vector<2x256xf32> to vector<2xf32>
    %61 = vector.shape_cast %60 : vector<2xf32> to vector<2x1xf32>
    %c0_42 = arith.constant 0 : index
    %c0_43 = arith.constant 0 : index
    %62 = vector.load %arg9[%c0_42, %c0_43] : memref<2x1xf32, #tpu.memory_space<vmem>>, vector<2x1xf32>
    %63 = arith.addf %61, %62 : vector<2x1xf32>
    %cst_44 = arith.constant 0.000000e+00 : f32
    %64 = vector.broadcast %cst_44 : f32 to vector<2x1xf32>
    %65 = arith.maximumf %63, %64 : vector<2x1xf32>
    %c0_45 = arith.constant 0 : index
    %c0_46 = arith.constant 0 : index
    %66 = vector.load %arg10[%c0_45, %c0_46] : memref<2x256xf32, #tpu.memory_space<vmem>>, vector<2x256xf32>
    %67 = vector.broadcast %65 : vector<2x1xf32> to vector<2x256xf32>
    %68 = arith.mulf %67, %66 : vector<2x256xf32>
    %cst_47 = arith.constant dense<0.000000e+00> : vector<256xf32>
    %69 = vector.multi_reduction <add>, %68, %cst_47 [0] : vector<2x256xf32> to vector<256xf32>
    %70 = vector.shape_cast %69 : vector<256xf32> to vector<1x256xf32>
    %c0_48 = arith.constant 0 : index
    %c0_49 = arith.constant 0 : index
    %71 = vector.load %arg11[%c0_48, %c0_49] : memref<1x256xf32, #tpu.memory_space<vmem>>, vector<1x256xf32>
    %72 = arith.addf %70, %71 : vector<1x256xf32>
    %73 = arith.negf %72 : vector<1x256xf32>
    %74 = math.exp %73 : vector<1x256xf32>
    %cst_50 = arith.constant 1.000000e+00 : f32
    %75 = vector.broadcast %cst_50 : f32 to vector<1x256xf32>
    %76 = arith.addf %75, %74 : vector<1x256xf32>
    %77 = arith.divf %75, %76 : vector<1x256xf32>
    %78 = vector.broadcast %77 : vector<1x256xf32> to vector<16x256xf32>
    %79 = arith.mulf %52, %78 : vector<16x256xf32>
    %80 = arith.addf %79, %1 : vector<16x256xf32>
    %cst_51 = arith.constant 0.000000e+00 : f32
    %81 = vector.broadcast %cst_51 : f32 to vector<16x256xf32>
    %82 = arith.maximumf %80, %81 : vector<16x256xf32>
    %c0_52 = arith.constant 0 : index
    %c0_53 = arith.constant 0 : index
    %c0_54 = arith.constant 0 : index
    %83 = vector.load %arg12[%c0_52, %c0_53, %c0_54] : memref<1x16x256xf32, #tpu.memory_space<vmem>>, vector<1x16x256xf32>
    %84 = vector.shape_cast %83 : vector<1x16x256xf32> to vector<16x256xf32>
    %85 = vector.shape_cast %82 : vector<16x256xf32> to vector<1x16x256xf32>
    tpu.vector_store %arg12[%c0_52, %c0_53, %c0_54], %85 {strides = array<i32>} : memref<1x16x256xf32, #tpu.memory_space<vmem>>, vector<1x16x256xf32>,
    return
  }
  func.func @transform_0(%arg0: i32) -> (i32, i32, i32) {
    %c0_i32 = arith.constant 0 : i32
    %c0_i32_0 = arith.constant 0 : i32
    %c0_i32_1 = arith.constant 0 : i32
    return %arg0, %c0_i32, %c0_i32_0 : i32, i32, i32
  }
  func.func @transform_1(%arg0: i32) -> (i32, i32) {
    %c0_i32 = arith.constant 0 : i32
    %c0_i32_0 = arith.constant 0 : i32
    %c0_i32_1 = arith.constant 0 : i32
    return %c0_i32, %c0_i32_0 : i32, i32
  }
  func.func @transform_2(%arg0: i32) -> (i32, i32) {
    %c0_i32 = arith.constant 0 : i32
    %c0_i32_0 = arith.constant 0 : i32
    %c0_i32_1 = arith.constant 0 : i32
    return %c0_i32, %c0_i32_0 : i32, i32
  }
  func.func @transform_3(%arg0: i32) -> (i32, i32) {
    %c0_i32 = arith.constant 0 : i32
    %c0_i32_0 = arith.constant 0 : i32
    %c0_i32_1 = arith.constant 0 : i32
    return %c0_i32, %c0_i32_0 : i32, i32
  }
  func.func @transform_4(%arg0: i32) -> (i32, i32) {
    %c0_i32 = arith.constant 0 : i32
    %c0_i32_0 = arith.constant 0 : i32
    %c0_i32_1 = arith.constant 0 : i32
    return %c0_i32, %c0_i32_0 : i32, i32
  }
  func.func @transform_5(%arg0: i32) -> (i32, i32) {
    %c0_i32 = arith.constant 0 : i32
    %c0_i32_0 = arith.constant 0 : i32
    %c0_i32_1 = arith.constant 0 : i32
    return %c0_i32, %c0_i32_0 : i32, i32
  }
  func.func @transform_6(%arg0: i32) -> (i32, i32) {
    %c0_i32 = arith.constant 0 : i32
    %c0_i32_0 = arith.constant 0 : i32
    %c0_i32_1 = arith.constant 0 : i32
    return %c0_i32, %c0_i32_0 : i32, i32
  }
  func.func @transform_7(%arg0: i32) -> (i32, i32) {
    %c0_i32 = arith.constant 0 : i32
    %c0_i32_0 = arith.constant 0 : i32
    %c0_i32_1 = arith.constant 0 : i32
    return %c0_i32, %c0_i32_0 : i32, i32
  }
  func.func @transform_8(%arg0: i32) -> (i32, i32) {
    %c0_i32 = arith.constant 0 : i32
    %c0_i32_0 = arith.constant 0 : i32
    %c0_i32_1 = arith.constant 0 : i32
    return %c0_i32, %c0_i32_0 : i32, i32
  }
  func.func @transform_9(%arg0: i32) -> (i32, i32) {
    %c0_i32 = arith.constant 0 : i32
    %c0_i32_0 = arith.constant 0 : i32
    %c0_i32_1 = arith.constant 0 : i32
    return %c0_i32, %c0_i32_0 : i32, i32
  }
  func.func @transform_10(%arg0: i32) -> (i32, i32) {
    %c0_i32 = arith.constant 0 : i32
    %c0_i32_0 = arith.constant 0 : i32
    %c0_i32_1 = arith.constant 0 : i32
    return %c0_i32, %c0_i32_0 : i32, i32
  }
  func.func @transform_11(%arg0: i32) -> (i32, i32, i32) {
    %c0_i32 = arith.constant 0 : i32
    %c0_i32_0 = arith.constant 0 : i32
    %c0_i32_1 = arith.constant 0 : i32
    return %arg0, %c0_i32, %c0_i32_0 : i32, i32, i32
  }
}

</mosaic_0001>

<bundles_post_ra>
// kernel: tpu_custom_call.1
= control target key start
LH: loop header
LB: loop body
LE: loop exit
PB: predicated region body
PF: predicated region fallthrough
CT: control target
= control target key end

     0   :  { %s3756_s0 = inlined_call_operand.hbm [shape: f32[2,16,256], index: 0, kind: input, shape index: {}]   ;;  %s3757_s1 = inlined_call_operand.hbm [shape: bf16[768,256], index: 1, kind: input, shape index: {}]   ;;  %s3758_s2 = inlined_call_operand.hbm [shape: f32[1,256], index: 2, kind: input, shape index: {}]   ;;  %s3759_s3 = inlined_call_operand.hbm [shape: f32[1,256], index: 3, kind: input, shape index: {}]   ;;  %s3760_s4 = inlined_call_operand.hbm [shape: bf16[768,256], index: 4, kind: input, shape index: {}]   ;;  %s3761_s5 = inlined_call_operand.vmem [shape: f32[1,256], index: 5, kind: input, shape index: {}]   ;;  %s3762_s6 = inlined_call_operand.vmem [shape: f32[1,256], index: 6, kind: input, shape index: {}]   ;;  %s3763_s7 = inlined_call_operand.vmem [shape: f32[2,256], index: 7, kind: input, shape index: {}]   ;;  %s3764_s8 = inlined_call_operand.vmem [shape: f32[2,1], index: 8, kind: input, shape index: {}]   ;;  %s3765_s9 = inlined_call_operand.vmem [shape: f32[2,256], index: 9, kind: input, shape index: {}]   ;;  %s3766_s10 = inlined_call_operand.vmem [shape: f32[1,256], index: 10, kind: input, shape index: {}]   ;;  %s3767_s11 = inlined_call_operand.hbm [shape: f32[2,16,256], index: 11, kind: output, shape index: {}]  }
   0x1   :  { %3772 = sst [smem:[#allocation18_spill]] %s3757_s1 }
   0x2   :  { %3773 = sst [smem:[#allocation19_spill]] %s3758_s2 }
   0x3   :  { %3774 = sst [smem:[#allocation20_spill]] %s3759_s3 }
   0x4   :  { %3775 = sst [smem:[#allocation21_spill]] %s3760_s4 }
   0x5   :  { %16 = vsyncpa [#allocation4], 0 }
   0x6   :  { %18 = vsyncpa [#allocation4 + $0x1], 0 }
   0x7   :  { %19 = vsyncpa [#allocation7], 0 }
   0x8   :  { %20 = vsyncpa [#allocation10], 0 }
   0x9   :  { %21 = vsyncpa [#allocation5], 0 }
   0xa   :  { %23 = vsyncpa [#allocation5 + $0x1], 0  ;;  %s3381_s17 = smov 0   ;;  %s3383_s18 = smov 0  }
   0xb   :  { %s3385_s19 = smov 0   ;;  %s3387_s20 = smov 0  }
   0xc LB: > { %s3402_s21 = sadd.s32 4294967295, %s3304_s20   ;;  %s2412_s22 = sadd.s32 4294967294, %s3304_s20   ;;  %s3304_s20 = sphi %s3387_s20, %s3805_s20   ;;  %s3300_s19 = sphi %s3385_s19, %s3804_s19   ;;  %s3296_s18 = sphi %s3383_s18, %s3803_s18   ;;  %s3292_s17 = sphi %s3381_s17, %s3802_s17  }
   0xd   : > { %p49_p0 = scmp.ne.s32.totalorder %s3296_s18, %s3292_s17  ;;  %p3768_p1 = scmp.eq.s32.totalorder %s3402_s21, 0 }
   0xe   : > { %p289_p3 = scmp.eq.s32.totalorder %s2412_s22, 1  ;;  %p2413_p5 = scmp.ge.s32.totalorder %s3304_s20, 1 }
   0xf   : > { %p3411_p4 = por %p3768_p1, %p49_p0  ;;  %p296_p7 = scmp.lt.s32.totalorder %s3304_s20, 3 }
  0x10   : > { %p3416_p6 = por %p289_p3, %p49_p0  ;;  %s3306_s26 = smov [#allocation6]  }
  0x11   : > { %s3776_s23 = scalar_select %p3411_p4, 1, 0 }
  0x12   : > { %s3777_s24 = scalar_select %p3416_p6, 1, 0 }
  0x13   : > { %p3421_p8 = pnand %p2413_p5, %p296_p7  ;;  %s308_s27 = sshll.u32 %s3306_s26, 4  ;;  %s309_s27 = int_to_ptr.vmem [resolvable:$true] %s308_s27 }
  0x14   : > { %s3307_s29 = smov [#allocation9]   ;;  %s3308_s12 = smov [#allocation8]  }
  0x15   : > { %s3778_s25 = scalar_select %p3421_p8, 1, 0 }
  0x16   : > { %p2723_p9 = pneg %p3421_p8  ;;  %s333_s30 = sshll.u32 %s3307_s29, 4  ;;  %s334_s30 = int_to_ptr.vmem [resolvable:$true] %s333_s30 }
  0x17   : > { %s322_s13 = sshll.u32 %s3308_s12, 4  ;;  %s3111_s14 = scalar_lea.vmem %s309_s27, 12288  ;;  %s323_s13 = int_to_ptr.vmem [resolvable:$true] %s322_s13 }
  0x18   : > { %p3430_p11 = pnand %p2723_p9, %p3768_p1  ;;  %p3112_p13 = scmp.ne.s32.totalorder %s309_s27, %s3111_s14 }
  0x19   : > { %p3119_p5 = scmp.lt.s32.totalorder %s309_s27, %s309_s27  ;;  %p3120_p7 = scmp.lt.s32.totalorder %s3111_s14, %s3111_s14 }
  0x1a   : > { %p3102_p12 = pneg %p3430_p11 }
  0x1b   : > { %p3121_p9 = por %p3120_p7, %p3119_p5 }
  0x1c   : > { %p3114_p0 = pnand %p3112_p13, %p3102_p12 }
  0x1e   : > { %p3115_p3 = pneg %p3114_p0 }
  0x20   : > { %p3122_p10 = pnand %p3121_p9, %p3115_p3 }
  0x22   : > { %3125 = shalt.err (!%p3122_p10)
}
  0x23   : > { %s3309_s15 = smov 128   ;;  %s3310_s16 = smov 8  }
  0x24   : > { %s3780_s1 = sld [smem:[#allocation18_spill]]  ;;  %s3137_s29 = scalar_lea.vmem %s334_s30, 32 }
  0x25   : > { %p3138_p13 = scmp.ne.s32.totalorder %s334_s30, %s3137_s29  ;;  %p3145_p3 = scmp.lt.s32.totalorder %s334_s30, %s334_s30 }
  0x26   : > { %p3146_p10 = scmp.lt.s32.totalorder %s3137_s29, %s3137_s29 }
  0x27   : > { %p3140_p0 = pnand %p3138_p13, %p3102_p12 }
  0x28   : > { %p3147_p7 = por %p3146_p10, %p3145_p3 }
  0x29   : > { %p3141_p5 = pneg %p3140_p0 }
  0x2a   : > { %2726 = dma.hbm_to_vmem [thread:$0]  (!%p3430_p11), %s3780_s1, 12288, %s309_s27, [#allocation7], %s3309_s15, %s3309_s15, %s3310_s16  }
  0x2b   : > { %p3148_p9 = pnand %p3147_p7, %p3141_p5 }
  0x2d   : > { %3151 = shalt.err (!%p3148_p9)
}
  0x2e   : > { %s3781_s3 = sld [smem:[#allocation20_spill]]  ;;  %s3163_s27 = scalar_lea.vmem %s323_s13, 32 }
  0x2f   : > { %p3164_p1 = scmp.ne.s32.totalorder %s323_s13, %s3163_s27  ;;  %p3171_p0 = scmp.lt.s32.totalorder %s323_s13, %s323_s13 }
  0x30   : > { %p3172_p6 = scmp.lt.s32.totalorder %s3163_s27, %s3163_s27 }
  0x31   : > { %p3166_p2 = pnand %p3164_p1, %p3102_p12 }
  0x32   : > { %p3173_p4 = por %p3172_p6, %p3171_p0 }
  0x33   : > { %p3167_p13 = pneg %p3166_p2 }
  0x34   : > { %2732 = dma.hbm_to_vmem [thread:$0]  (!%p3430_p11), %s3781_s3, 32, %s334_s30, [#allocation10]  }
  0x35   : > { %p3174_p3 = pnand %p3173_p4, %p3167_p13 }
  0x37   : > { %3177 = shalt.err (!%p3174_p3)
}
  0x38   : > { %s3782_s2 = sld [smem:[#allocation19_spill]]  ;;  %s3311_s30 = smov [#allocation11]  }
  0x39   : > { %s343_s29 = sshll.u32 %s3311_s30, 4  ;;  %s344_s29 = int_to_ptr.vmem [resolvable:$true] %s343_s29 }
  0x3a   : > { %s3189_s12 = scalar_lea.vmem %s344_s29, 12288  ;;  %p3197_p10 = scmp.lt.s32.totalorder %s344_s29, %s344_s29 }
  0x3b   : > { %p3190_p5 = scmp.ne.s32.totalorder %s344_s29, %s3189_s12  ;;  %p3198_p6 = scmp.lt.s32.totalorder %s3189_s12, %s3189_s12 }
  0x3d   : > { %p3192_p1 = pnand %p3190_p5, %p3102_p12  ;;  %p3199_p4 = por %p3198_p6, %p3197_p10 }
  0x3e   : > { %2729 = dma.hbm_to_vmem [thread:$0]  (!%p3430_p11), %s3782_s2, 32, %s323_s13, [#allocation7]  }
  0x3f   : > { %p3193_p2 = pneg %p3192_p1 }
  0x41   : > { %p3200_p7 = pnand %p3199_p4, %p3193_p2 }
  0x43   : > { %3203 = shalt.err (!%p3200_p7)
}
  0x44   : > { %s3783_s4 = sld [smem:[#allocation21_spill]]  ;;  %s3475_s27 = sadd.s32 1, %s3304_s20  }
  0x45   : > { %s36_s28 = sadd.s32 1, %s3300_s19  ;;  %s33_s22 = ssub.s32 %s3304_s20, %s3475_s27 }
  0x46   : > { %p43_p12 = scmp.ne.s32.totalorder %s3300_s19, %s3296_s18  ;;  %p34_p9 = scmp.eq.s32.totalorder %s33_s22, 0 }
  0x47   : > { %p44_p13 = scmp.eq.s32.totalorder %s3304_s20, 0  ;;  %p3784_p0 = scmp.eq.s32.totalorder %s3402_s21, 1 }
  0x48   : > { %p2748_p5 = scmp.lt.s32.totalorder %s3304_s20, 2  ;;  %s375_s12 = sand.u32 1, %s3300_s19  }
  0x49   : > { %p3485_p3 = por %p3784_p0, %p43_p12  ;;  %p45_p1 = por %p44_p13, %p43_p12 }
  0x4a   : > { %2735 = dma.hbm_to_vmem [thread:$0]  (!%p3430_p11), %s3783_s4, 12288, %s344_s29, [#allocation10], %s3309_s15, %s3309_s15, %s3310_s16  }
  0x4b   : > { %s3785_s26 = scalar_select %p3485_p3, 1, 0 }
  0x4c   : > { %s3491_s30 = scalar_select %p34_p9, %s3300_s19, %s36_s28  }
  0x4d   : > { %s2419_s13 = sshll.u32 %s375_s12, 5  ;;  %s2653_s15 = sshll.u32 %s3304_s20, 9 }
  0x4e   : > { %3786 = sst [smem:[#allocation17_spill]] %s3491_s30  ;;  %s3498_s14 = scalar_lea.hbm %s3756_s0, %s2653_s15 }
  0x4f   : > { %s379_s22 = scalar_lea.vmem [#allocation3], %s2419_s13  ;;  %p3502_p11 = pnand %p2748_p5, %p45_p1 }
  0x50   : > { %s386_s1 = sshll.u32 %s379_s22, 4  ;;  %s3506_s28 = scalar_lea.sflag [#allocation4], %s375_s12  ;;  %s3500_s1 = int_to_ptr.vmem [resolvable:$true] %s386_s1 }
  0x51   : > { %s3204_s3 = scalar_lea.hbm %s3498_s14, 512  ;;  %p3206_p10 = pneg %p3502_p11 }
  0x52   : > { %p3205_p2 = scmp.ne.s32.totalorder %s3498_s14, %s3204_s3  ;;  %s3209_s13 = scalar_lea.hbm %s3756_s0, 1024 }
  0x53   : > { %p3210_p7 = scmp.lt.s32.totalorder %s3498_s14, %s3756_s0  ;;  %p3211_p12 = scmp.lt.s32.totalorder %s3209_s13, %s3204_s3 }
  0x54   : > { %p3207_p6 = pnand %p3206_p10, %p3205_p2 }
  0x55   : > { %p3212_p9 = por %p3211_p12, %p3210_p7 }
  0x56   : > { %p3208_p4 = pneg %p3207_p6 }
  0x58   : > { %p3213_p13 = pnand %p3212_p9, %p3208_p4 }
  0x5a   : > { %3216 = shalt.err (!%p3213_p13)
}
  0x5b   : > { %s3217_s12 = scalar_lea.vmem %s3500_s1, 512  ;;  %s3312_s4 = smov [#allocation3]  }
  0x5c   : > { %p3218_p0 = scmp.ne.s32.totalorder %s3500_s1, %s3217_s12  ;;  %s3222_s30 = sshll.u32 %s3312_s4, 4  ;;  %s3223_s30 = int_to_ptr.vmem [resolvable:$false] %s3222_s30 }
  0x5d   : > { %s3224_s15 = scalar_lea.vmem %s3223_s30, 1024  ;;  %p3225_p2 = scmp.lt.s32.totalorder %s3500_s1, %s3223_s30 }
  0x5e   : > { %p3220_p5 = pnand %p3218_p0, %p3206_p10  ;;  %p3226_p6 = scmp.lt.s32.totalorder %s3224_s15, %s3217_s12 }
  0x60   : > { %p3221_p1 = pneg %p3220_p5  ;;  %p3227_p3 = por %p3226_p6, %p3225_p2 }
  0x62   : > { %p3228_p8 = pnand %p3227_p3, %p3221_p1 }
  0x64   : > { %3231 = shalt.err (!%p3228_p8)
}
  0x65   : > { %s3313_s3 = smov 256   ;;  %s3314_s16 = smov 16  }
  0x66   : > { %2739 = dma.hbm_to_vmem [thread:$0]  (!%p3502_p11), %s3498_s14, 512, %s3500_s1, %s3506_s28, %s3313_s3, %s3313_s3, %s3314_s16  }
  0x67   : > { %p3788_p10 = scmp.ne.s32.totalorder %s3778_s25, 0 }
  0x68   : > { %s3530_s4 = sand.u32 (!%p3788_p10), 1, %s3296_s18   ;;  %p3789_p8 = scmp.ne.s32.totalorder (!%p3788_p10), %s3776_s23, 0 }
  0x69   : > { %398 = sbr.rel (%p3788_p10) target bundleno = 1095 (0x447), region = 64  ;;  %s2423_s30 = sshll.u32 (!%p3788_p10), %s3530_s4, 5 }
  0x6a   : > { %s401_s13 = scalar_lea.sflag (!%p3788_p10), [#allocation4], %s3530_s4  ;;  %s3536_s29 = scalar_lea.vmem (!%p3788_p10), [#allocation3], %s2423_s30 }
  0x6e   : > { %3275 = dma.done.wait (%p3789_p8), %s401_s13, 512  }
  0x6f   : > { %3277 = vsyncadd (%p3789_p8), %s401_s13, 4294966784  ;;  %p3790_p3 = scmp.eq.s32.totalorder %s3402_s21, 0 }
  0x71   : > { %3279 = dma.done.wait (%p3790_p3), [#allocation7], 12320   ;;  %p3791_p11 = pmov %p3790_p3 }
  0x72   : > { %p3792_p4 = pmov %p3790_p3 }
  0x73   : > { %3281 = vsyncadd (%p3791_p11), [#allocation7], 4294954976 }
  0x74   : > { %3283 = dma.done.wait (%p3792_p4), [#allocation10], 12320   ;;  %p3793_p7 = pmov %p3790_p3 }
  0x75   : > { %v2800_v0 = vld [vmem:[#allocation6 + $0x74] ss:$8 sps:$4 sm:$0xff]   ;;  %v2804_v2 = vld [vmem:[#allocation6 + $0x70] ss:$8 sps:$4 sm:$0xff]   ;;  %v2806_v4 = vld [vmem:[#allocation6 + $0x64] ss:$8 sps:$4 sm:$0xff]   ;;  %v463_v38 = vlaneseq }
  0x76   : > { %3285 = vsyncadd (%p3793_p7), [#allocation10], 4294954976  ;;  %v2802_v1 = vld [vmem:[#allocation6 + $0x174] ss:$8 sps:$4 sm:$0xff]   ;;  %1150 = vmatprep.subr.bf16.mxu0 %v2800_v0  ;;  %v2805_v3 = vld [vmem:[#allocation6 + $0x170] ss:$8 sps:$4 sm:$0xff]  }
  0x77   : > { %1193 = vmatprep.subr.bf16.mxu1 %v2802_v1  ;;  %1151 = vmatpush1.bf16.msra.mxu0 %v2804_v2  ;;  %v2808_v5 = vld [vmem:[#allocation6 + $0x164] ss:$8 sps:$4 sm:$0xff]   ;;  %v2810_v6 = vld [vmem:[#allocation6 + $0x60] ss:$8 sps:$4 sm:$0xff]   ;;  %v2812_v8 = vld [vmem:[#allocation6 + $0x54] ss:$8 sps:$4 sm:$0xff]  }
  0x78   : > { %1194 = vmatpush1.bf16.msra.mxu1 %v2805_v3  ;;  %1152 = vmatprep.subr.bf16.mxu0 %v2806_v4  ;;  %v2811_v7 = vld [vmem:[#allocation6 + $0x160] ss:$8 sps:$4 sm:$0xff]   ;;  %v2814_v9 = vld [vmem:[#allocation6 + $0x154] ss:$8 sps:$4 sm:$0xff]   ;;  %v2816_v10 = vld [vmem:[#allocation6 + $0x50] ss:$8 sps:$4 sm:$0xff]  }
  0x79   : > { %1195 = vmatprep.subr.bf16.mxu1 %v2808_v5  ;;  %v2817_v11 = vld [vmem:[#allocation6 + $0x150] ss:$8 sps:$4 sm:$0xff]   ;;  %v2818_v12 = vld [vmem:[#allocation6 + $0x44] ss:$8 sps:$4 sm:$0xff]   ;;  %v2822_v14 = vld [vmem:[#allocation6 + $0x40] ss:$8 sps:$4 sm:$0xff]  }
  0x7a   : > { %v2820_v13 = vld [vmem:[#allocation6 + $0x144] ss:$8 sps:$4 sm:$0xff]   ;;  %v2823_v15 = vld [vmem:[#allocation6 + $0x140] ss:$8 sps:$4 sm:$0xff]   ;;  %v2824_v16 = vld [vmem:[#allocation6 + $0x34] ss:$8 sps:$4 sm:$0xff]  }
  0x7b   : > { %1153 = vmatpush1.bf16.msra.mxu0 %v2810_v6  ;;  %v2826_v17 = vld [vmem:[#allocation6 + $0x134] ss:$8 sps:$4 sm:$0xff]   ;;  %v2828_v18 = vld [vmem:[#allocation6 + $0x30] ss:$8 sps:$4 sm:$0xff]   ;;  %v2830_v20 = vld [vmem:[#allocation6 + $0x24] ss:$8 sps:$4 sm:$0xff]  }
  0x7c   : > { %1196 = vmatpush1.bf16.msra.mxu1 %v2811_v7  ;;  %1154 = vmatprep.subr.bf16.mxu0 %v2812_v8  ;;  %v2829_v19 = vld [vmem:[#allocation6 + $0x130] ss:$8 sps:$4 sm:$0xff]   ;;  %v2832_v21 = vld [vmem:[#allocation6 + $0x124] ss:$8 sps:$4 sm:$0xff]   ;;  %v2834_v22 = vld [vmem:[#allocation6 + $0x20] ss:$8 sps:$4 sm:$0xff]  }
  0x7d   : > { %1197 = vmatprep.subr.bf16.mxu1 %v2814_v9  ;;  %v2835_v23 = vld [vmem:[#allocation6 + $0x120] ss:$8 sps:$4 sm:$0xff]   ;;  %v2836_v24 = vld [vmem:[#allocation6 + $0x14] ss:$8 sps:$4 sm:$0xff]   ;;  %v2840_v26 = vld [vmem:[#allocation6 + $0x10] ss:$8 sps:$4 sm:$0xff]  }
  0x7e   : > { %v2838_v25 = vld [vmem:[#allocation6 + $0x114] ss:$8 sps:$4 sm:$0xff]   ;;  %v2841_v27 = vld [vmem:[#allocation6 + $0x110] ss:$8 sps:$4 sm:$0xff]   ;;  %v2842_v28 = vld [vmem:[#allocation6 + $0x4] ss:$8 sps:$4 sm:$0xff]  }
  0x7f   : > { %1155 = vmatpush1.bf16.msra.mxu0 %v2816_v10  ;;  %v2844_v29 = vld [vmem:[#allocation6 + $0x104] ss:$8 sps:$4 sm:$0xff]   ;;  %v2846_v30 = vld [vmem:[#allocation6] ss:$8 sps:$4 sm:$0xff]   ;;  %v2848_v32 = vld [vmem:[#allocation6 + $0xf4] ss:$8 sps:$4 sm:$0xff]  }
  0x80   : > { %1198 = vmatpush1.bf16.msra.mxu1 %v2817_v11  ;;  %1156 = vmatprep.subr.bf16.mxu0 %v2818_v12  ;;  %v2847_v31 = vld [vmem:[#allocation6 + $0x100] ss:$8 sps:$4 sm:$0xff]   ;;  %v2850_v33 = vld [vmem:[#allocation6 + $0x1f4] ss:$8 sps:$4 sm:$0xff]   ;;  %v2852_v34 = vld [vmem:[#allocation6 + $0xf0] ss:$8 sps:$4 sm:$0xff]  }
  0x81   : > { %1199 = vmatprep.subr.bf16.mxu1 %v2820_v13  ;;  %v2853_v35 = vld [vmem:[#allocation6 + $0x1f0] ss:$8 sps:$4 sm:$0xff]   ;;  %v2854_v36 = vld [vmem:[#allocation6 + $0xe4] ss:$8 sps:$4 sm:$0xff]   ;;  %v2858_v39 = vld [vmem:[#allocation6 + $0xe0] ss:$8 sps:$4 sm:$0xff]  }
  0x82   : > { %v2856_v37 = vld [vmem:[#allocation6 + $0x1e4] ss:$8 sps:$4 sm:$0xff]   ;;  %v2859_v40 = vld [vmem:[#allocation6 + $0x1e0] ss:$8 sps:$4 sm:$0xff]   ;;  %v2860_v41 = vld [vmem:[#allocation6 + $0xd4] ss:$8 sps:$4 sm:$0xff]  }
  0x83   : > { %1157 = vmatpush1.bf16.msra.mxu0 %v2822_v14  ;;  %v2862_v42 = vld [vmem:[#allocation6 + $0x1d4] ss:$8 sps:$4 sm:$0xff]   ;;  %v3550_v43 = vshrl.u32 %v463_v38, 7  ;;  %v2864_v44 = vld [vmem:[#allocation6 + $0xd0] ss:$8 sps:$4 sm:$0xff]   ;;  %v3553_v48 = vld [vmem:[%s3536_s29 + $0x8] sm:$0xff] }
  0x84   : > { %1200 = vmatpush1.bf16.msra.mxu1 %v2823_v15  ;;  %1158 = vmatprep.subr.bf16.mxu0 %v2824_v16  ;;  %v2865_v45 = vld [vmem:[#allocation6 + $0x1d0] ss:$8 sps:$4 sm:$0xff]   ;;  %v2866_v46 = vld [vmem:[#allocation6 + $0xc4] ss:$8 sps:$4 sm:$0xff]   ;;  %v2870_v49 = vld [vmem:[#allocation6 + $0xc0] ss:$8 sps:$4 sm:$0xff]  }
  0x85   : > { %1201 = vmatprep.subr.bf16.mxu1 %v2826_v17  ;;  %v2868_v47 = vld [vmem:[#allocation6 + $0x1c4] ss:$8 sps:$4 sm:$0xff]   ;;  %vm466_vm0 = vcmp.ge.s32.totalorder %v3550_v43, 1  ;;  %vm472_vm1 = vcmp.lt.s32.totalorder %v3550_v43, 1  ;;  %v2871_v50 = vld [vmem:[#allocation6 + $0x1c0] ss:$8 sps:$4 sm:$0xff]  }
  0x86   : > { %v462_v51 = vld [vmem:[%s3536_s29 + $0x18] sm:$0xff]  ;;  %v469_v52 = vrot.slane %v3553_v48, 7  ;;  %vm3315_vm2 = vmmov 1   ;;  %v2878_v63 = vld [vmem:[#allocation6 + $0xa4] ss:$8 sps:$4 sm:$0xff]   ;;  %v3577_v6 = vld [vmem:[%s3536_s29 + $0x10] sm:$0xff] }
  0x87   : > { %1159 = vmatpush1.bf16.msra.mxu0 %v2828_v18  ;;  %v471_v53 = vrot.slane %v462_v51, 7  ;;  %v2670_v54 = vpack.c.bf16 %v462_v51, %v3553_v48  ;;  %v2872_v55 = vld [vmem:[#allocation6 + $0xb4] ss:$8 sps:$4 sm:$0xff]   ;;  %vm3567_vm3 = vmpackc.low %vm3315_vm2, %vm466_vm0  ;;  %v2876_v60 = vld [vmem:[#allocation6 + $0xb0] ss:$8 sps:$4 sm:$0xff]   ;;  %v470_v11 = vrot.slane %v3577_v6, 7 }
  0x88   : > { %1202 = vmatpush1.bf16.msra.mxu1 %v2829_v19  ;;  %1160 = vmatprep.subr.bf16.mxu0 %v2830_v20  ;;  %v2874_v56 = vld [vmem:[#allocation6 + $0x1b4] ss:$8 sps:$4 sm:$0xff]   ;;  %v2877_v61 = vld [vmem:[#allocation6 + $0x1b0] ss:$8 sps:$4 sm:$0xff]   ;;  %v2880_v0 = vld [vmem:[#allocation6 + $0x1a4] ss:$8 sps:$4 sm:$0xff]  }
  0x89   : > { %1203 = vmatprep.subr.bf16.mxu1 %v2832_v21  ;;  %v474_v57 = vsel %vm472_vm1, %v469_v52, %v471_v53  ;;  %v476_v58 = vsel %vm472_vm1, %v471_v53, %v469_v52  ;;  %1225 = vmatprep.mubr.bf16.mxu1 %v2670_v54  ;;  %v2882_v1 = vld [vmem:[#allocation6 + $0xa0] ss:$8 sps:$4 sm:$0xff]   ;;  %v2884_v3 = vld [vmem:[#allocation6 + $0x94] ss:$8 sps:$4 sm:$0xff]   ;;  %v2888_v7 = vld [vmem:[#allocation6 + $0x90] ss:$8 sps:$4 sm:$0xff]  }
  0x8a   : > { %v2674_v62 = vpack.c.bf16 %v474_v57, %v476_v58  ;;  %v2883_v2 = vld [vmem:[#allocation6 + $0x1a0] ss:$8 sps:$4 sm:$0xff]   ;;  %v2886_v4 = vld [vmem:[#allocation6 + $0x194] ss:$8 sps:$4 sm:$0xff]   ;;  %v2889_v8 = vld [vmem:[#allocation6 + $0x190] ss:$8 sps:$4 sm:$0xff]  }
  0x8b   : > { %1161 = vmatpush1.bf16.msra.mxu0 %v2834_v22  ;;  %v3574_v5 = vld [vmem:[%s3536_s29] sm:$0xff]  ;;  %v484_v13 = vrot.slane %v3553_v48, 1  ;;  %v486_v14 = vrot.slane %v462_v51, 1  ;;  %v465_v15 = vadd.s32 8, %v3550_v43  ;;  %vm487_vm4 = vcmp.lt.s32.totalorder %v3550_v43, 7  ;;  %s2666_s1 = sshll.u32 %s3402_s21, 9 }
  0x8c   : > { %1204 = vmatpush1.bf16.msra.mxu1 %v2835_v23  ;;  %1162 = vmatprep.subr.bf16.mxu0 %v2836_v24  ;;  %v2890_v9 = vld [vmem:[#allocation6 + $0x84] ss:$8 sps:$4 sm:$0xff]   ;;  %v468_v10 = vrot.slane %v3574_v5, 7  ;;  %v2894_v16 = vld [vmem:[#allocation6 + $0x80] ss:$8 sps:$4 sm:$0xff]   ;;  %v2669_v24 = vpack.c.bf16 %v3577_v6, %v3574_v5  ;;  %v483_v57 = vrot.slane %v3574_v5, 1  ;;  %s3711_s28 = scalar_lea.hbm %s3767_s11, %s2666_s1 }
  0x8d   : > { %1205 = vmatprep.subr.bf16.mxu1 %v2838_v25  ;;  %2675 = vmatprep.mubr.msk.bf16.mxu0 %vm3567_vm3, %v2674_v62  ;;  %v2892_v12 = vld [vmem:[#allocation6 + $0x184] ss:$8 sps:$4 sm:$0xff]   ;;  %v2895_v17 = vld [vmem:[#allocation6 + $0x180] ss:$8 sps:$4 sm:$0xff]   ;;  %v2898_v20 = vld [vmem:[#allocation6 + $0x274] ss:$8 sps:$4 sm:$0xff]   ;;  %v489_v21 = vsel %vm487_vm4, %v484_v13, %v486_v14  ;;  %v491_v22 = vsel %vm487_vm4, %v486_v14, %v484_v13 }
  0x8e   : > { %v473_v18 = vsel %vm472_vm1, %v468_v10, %v470_v11  ;;  %v475_v19 = vsel %vm472_vm1, %v470_v11, %v468_v10  ;;  %vm482_vm5 = vcmp.le.s32.totalorder %v465_v15, 14  ;;  %v2896_v25 = vld [vmem:[#allocation6 + $0x270] ss:$8 sps:$4 sm:$0xff]   ;;  %v2916_v38 = vld [vmem:[#allocation6 + $0x214] ss:$8 sps:$4 sm:$0xff]   ;;  %v485_v58 = vrot.slane %v3577_v6, 1 }
  0x8f   : > { %1163 = vmatpush1.bf16.msra.mxu0 %v2840_v26  ;;  %v2677_v23 = vpack.c.bf16 %v473_v18, %v475_v19  ;;  %v2680_v26 = vpack.c.bf16 %v491_v22, %v489_v21  ;;  %vm3595_vm6 = vmpackc.low %vm482_vm5, %vm3315_vm2  ;;  %v2926_v48 = vld [vmem:[#allocation6 + $0x2d0] ss:$8 sps:$4 sm:$0xff]   ;;  %v2934_v51 = vld [vmem:[#allocation6 + $0x2b4] ss:$8 sps:$4 sm:$0xff]   ;;  %vm2195_vm7 = vcmask 1041408   ;;  %s458_s2 = scalar_lea.vmem [#allocation12], %s2423_s30 }
  0x90   : > { %1206 = vmatpush1.bf16.msra.mxu1 %v2841_v27  ;;  %1164 = vmatprep.subr.bf16.mxu0 %v2842_v28  ;;  %v2901_v27 = vld [vmem:[#allocation6 + $0x264] ss:$8 sps:$4 sm:$0xff]   ;;  %v2932_v52 = vld [vmem:[#allocation6 + $0x2b0] ss:$8 sps:$4 sm:$0xff]   ;;  %v2935_v54 = vld [vmem:[#allocation6 + $0x2a0] ss:$8 sps:$4 sm:$0xff]   ;;  %v488_v62 = vsel %vm487_vm4, %v483_v57, %v485_v58 }
  0x91   : > { %1207 = vmatprep.subr.bf16.mxu1 %v2844_v29  ;;  %v2899_v29 = vld [vmem:[#allocation6 + $0x260] ss:$8 sps:$4 sm:$0xff]   ;;  %v2937_v53 = vld [vmem:[#allocation6 + $0x2a4] ss:$8 sps:$4 sm:$0xff]   ;;  %v2956_v11 = vld [vmem:[#allocation11 + $0x150] ss:$8 sps:$4 sm:$0xff]  }
  0x92   : > { %v2952_v5 = vld [vmem:[#allocation11 + $0x164] ss:$8 sps:$4 sm:$0xff]   ;;  %v2961_v10 = vld [vmem:[#allocation11 + $0x54] ss:$8 sps:$4 sm:$0xff]   ;;  %v2962_v15 = vld [vmem:[#allocation11 + $0x140] ss:$8 sps:$4 sm:$0xff]  }
  0x93   : > { %1165 = vmatpush1.bf16.msra.mxu0 %v2846_v30  ;;  %v2904_v30 = vld [vmem:[#allocation6 + $0x254] ss:$8 sps:$4 sm:$0xff]   ;;  %v2955_v6 = vld [vmem:[#allocation11 + $0x64] ss:$8 sps:$4 sm:$0xff]   ;;  %v2973_v18 = vld [vmem:[#allocation11 + $0x34] ss:$8 sps:$4 sm:$0xff]  }
  0x94   : > { %1208 = vmatpush1.bf16.msra.mxu1 %v2847_v31  ;;  %1166 = vmatprep.subr.bf16.mxu0 %v2848_v32  ;;  %v2902_v31 = vld [vmem:[#allocation6 + $0x250] ss:$8 sps:$4 sm:$0xff]   ;;  %v2907_v32 = vld [vmem:[#allocation6 + $0x244] ss:$8 sps:$4 sm:$0xff]   ;;  %v2968_v19 = vld [vmem:[#allocation11 + $0x130] ss:$8 sps:$4 sm:$0xff]  }
  0x95   : > { %1209 = vmatprep.subr.bf16.mxu1 %v2850_v33  ;;  %v2905_v33 = vld [vmem:[#allocation6 + $0x240] ss:$8 sps:$4 sm:$0xff]   ;;  %s2301_s23 = sshll.u32 %s458_s2, 4  ;;  %s2288_s21 = scalar_lea.sflag [#allocation5], %s3530_s4  ;;  %s3713_s23 = int_to_ptr.vmem [resolvable:$true] %s2301_s23 }
  0x96   : > { %v2964_v13 = vld [vmem:[#allocation11 + $0x144] ss:$8 sps:$4 sm:$0xff]   ;;  %v2138_v28 = vld [vmem:[%s3762_s6] sm:$0x3]  ;;  %s3232_s30 = scalar_lea.vmem %s3713_s23, 512  ;;  %p3798_p9 = scmp.ne.s32.totalorder %s3785_s26, 0 }
  0x97   : > { %1167 = vmatpush2.bf16.msra.mxu0 %v2852_v34  ;;  %v2910_v34 = vld [vmem:[#allocation6 + $0x234] ss:$8 sps:$4 sm:$0xff]   ;;  %v2967_v14 = vld [vmem:[#allocation11 + $0x44] ss:$8 sps:$4 sm:$0xff]   ;;  %p3233_p12 = scmp.ne.s32.totalorder %s3713_s23, %s3232_s30 }
  0x98   : > { %1210 = vmatpush2.bf16.msra.mxu1 %v2853_v35  ;;  %1168 = vmatprep.subr.bf16.mxu0 %v2854_v36  ;;  %v2908_v35 = vld [vmem:[#allocation6 + $0x230] ss:$8 sps:$4 sm:$0xff]   ;;  %v2913_v36 = vld [vmem:[#allocation6 + $0x224] ss:$8 sps:$4 sm:$0xff]  }
  0x99   : > { %1211 = vmatprep.subr.bf16.mxu1 %v2856_v37  ;;  %v2911_v37 = vld [vmem:[#allocation6 + $0x220] ss:$8 sps:$4 sm:$0xff]   ;;  %p3234_p13 = pnand %p3233_p12, %p3798_p9 }
  0x9a   : > { %v2976_v21 = vld [vmem:[#allocation11 + $0x124] ss:$8 sps:$4 sm:$0xff]  }
  0x9b   : > { %1169 = vmatpush2.bf16.msra.mxu0 %v2858_v39  ;;  %v2914_v39 = vld [vmem:[#allocation6 + $0x210] ss:$8 sps:$4 sm:$0xff]   ;;  %p3235_p0 = pneg %p3234_p13 }
  0x9c   : > { %1212 = vmatpush2.bf16.msra.mxu1 %v2859_v40  ;;  %1170 = vmatprep.subr.bf16.mxu0 %v2860_v41  ;;  %v2919_v40 = vld [vmem:[#allocation6 + $0x204] ss:$8 sps:$4 sm:$0xff]   ;;  %v2917_v41 = vld [vmem:[#allocation6 + $0x200] ss:$8 sps:$4 sm:$0xff]  }
  0x9d   : > { %1213 = vmatprep.subr.bf16.mxu1 %v2862_v42  ;;  %v2922_v42 = vld [vmem:[#allocation6 + $0x2f4] ss:$8 sps:$4 sm:$0xff]   ;;  %v2979_v22 = vld [vmem:[#allocation11 + $0x24] ss:$8 sps:$4 sm:$0xff]  }
  0x9e   : > { %v3057_v59 = vld [vmem:[#allocation11 + $0x224] ss:$8 sps:$4 sm:$0xff]  }
  0x9f   : > { %1171 = vmatpush2.bf16.msra.mxu0 %v2864_v44  ;;  %v2920_v44 = vld [vmem:[#allocation6 + $0x2f0] ss:$8 sps:$4 sm:$0xff]  }
  0xa0   : > { %1214 = vmatpush2.bf16.msra.mxu1 %v2865_v45  ;;  %1172 = vmatprep.subr.bf16.mxu0 %v2866_v46  ;;  %v2925_v45 = vld [vmem:[#allocation6 + $0x2e4] ss:$8 sps:$4 sm:$0xff]   ;;  %v2923_v46 = vld [vmem:[#allocation6 + $0x2e0] ss:$8 sps:$4 sm:$0xff]  }
  0xa1   : > { %1215 = vmatprep.subr.bf16.mxu1 %v2868_v47  ;;  %v2928_v47 = vld [vmem:[#allocation6 + $0x2d4] ss:$8 sps:$4 sm:$0xff]  }
  0xa3   : > { %1173 = vmatpush2.bf16.msra.mxu0 %v2870_v49  ;;  %v2931_v49 = vld [vmem:[#allocation6 + $0x2c4] ss:$8 sps:$4 sm:$0xff]  }
  0xa4   : > { %1216 = vmatpush2.bf16.msra.mxu1 %v2871_v50  ;;  %1174 = vmatprep.subr.bf16.mxu0 %v2872_v55  ;;  %v2929_v50 = vld [vmem:[#allocation6 + $0x2c0] ss:$8 sps:$4 sm:$0xff]   ;;  %v2940_v55 = vld [vmem:[#allocation6 + $0x294] ss:$8 sps:$4 sm:$0xff]  }
  0xa5   : > { %1217 = vmatprep.subr.bf16.mxu1 %v2874_v56  ;;  %v2938_v56 = vld [vmem:[#allocation6 + $0x290] ss:$8 sps:$4 sm:$0xff]  }
  0xa7   : > { %1175 = vmatpush2.bf16.msra.mxu0 %v2876_v60  ;;  %v2943_v60 = vld [vmem:[#allocation6 + $0x284] ss:$8 sps:$4 sm:$0xff]  }
  0xa8   : > { %1218 = vmatpush2.bf16.msra.mxu1 %v2877_v61  ;;  %1176 = vmatprep.subr.bf16.mxu0 %v2878_v63  ;;  %v2941_v61 = vld [vmem:[#allocation6 + $0x280] ss:$8 sps:$4 sm:$0xff]   ;;  %v490_v63 = vsel %vm487_vm4, %v485_v58, %v483_v57  ;;  %v3025_v58 = vld [vmem:[#allocation11 + $0xa0] ss:$8 sps:$4 sm:$0xff]  }
  0xa9   : > { %1219 = vmatprep.subr.bf16.mxu1 %v2880_v0  ;;  %v2683_v0 = vpack.c.bf16 %v490_v63, %v488_v62  ;;  %v3027_v57 = vld [vmem:[#allocation11 + $0xa4] ss:$8 sps:$4 sm:$0xff]   ;;  %v3033_v62 = vld [vmem:[#allocation11 + $0x94] ss:$8 sps:$4 sm:$0xff]   ;;  %v3031_v63 = vld [vmem:[#allocation11 + $0x90] ss:$8 sps:$4 sm:$0xff]  }
  0xab   : > { %1177 = vmatpush2.bf16.msra.mxu0 %v2882_v1  ;;  %v2944_v1 = vld [vmem:[#allocation11 + $0x170] ss:$8 sps:$4 sm:$0xff]  }
  0xac   : > { %1220 = vmatpush2.bf16.msra.mxu1 %v2883_v2  ;;  %1178 = vmatprep.subr.bf16.mxu0 %v2884_v3  ;;  %v2946_v2 = vld [vmem:[#allocation11 + $0x174] ss:$8 sps:$4 sm:$0xff]   ;;  %v2947_v3 = vld [vmem:[#allocation11 + $0x70] ss:$8 sps:$4 sm:$0xff]  }
  0xad   : > { %1221 = vmatprep.subr.bf16.mxu1 %v2886_v4  ;;  %v2949_v4 = vld [vmem:[#allocation11 + $0x74] ss:$8 sps:$4 sm:$0xff]  }
  0xaf   : > { %1179 = vmatpush2.bf16.msra.mxu0 %v2888_v7  ;;  %v2950_v7 = vld [vmem:[#allocation11 + $0x160] ss:$8 sps:$4 sm:$0xff]  }
  0xb0   : > { %1222 = vmatpush2.bf16.msra.mxu1 %v2889_v8  ;;  %1180 = vmatprep.subr.bf16.mxu0 %v2890_v9  ;;  %v2953_v8 = vld [vmem:[#allocation11 + $0x60] ss:$8 sps:$4 sm:$0xff]   ;;  %v2958_v9 = vld [vmem:[#allocation11 + $0x154] ss:$8 sps:$4 sm:$0xff]  }
  0xb1   : > { %1223 = vmatprep.subr.bf16.mxu1 %v2892_v12  ;;  %v2959_v12 = vld [vmem:[#allocation11 + $0x50] ss:$8 sps:$4 sm:$0xff]  }
  0xb3   : > { %1181 = vmatpush2.bf16.msra.mxu0 %v2894_v16  ;;  %v2965_v16 = vld [vmem:[#allocation11 + $0x40] ss:$8 sps:$4 sm:$0xff]  }
  0xb4   : > { %1224 = vmatpush2.bf16.msra.mxu1 %v2895_v17  ;;  %1236 = vmatprep.subr.bf16.mxu0 %v2898_v20  ;;  %v2970_v17 = vld [vmem:[#allocation11 + $0x134] ss:$8 sps:$4 sm:$0xff]   ;;  %v2971_v20 = vld [vmem:[#allocation11 + $0x30] ss:$8 sps:$4 sm:$0xff]  }
  0xb5   : > { %1993 = vmatprep.subr.bf16.mxu1 %v2949_v4  ;;  %v3042_v4 = vld [vmem:[#allocation11 + $0x274] ss:$8 sps:$4 sm:$0xff]  }
  0xb6   : > { %2678 = vmatmul.mubr.msk.bf16.vlgmr.msra.gmra.mxu0 %vm3567_vm3, %v2677_v23  ;;  %v2974_v23 = vld [vmem:[#allocation11 + $0x120] ss:$8 sps:$4 sm:$0xff]  }
  0xb7   : > { %1226 = vmatmul.mubr.bf16.vlgmr.msra.gmra.mxu1 %v2669_v24  ;;  %1237 = vmatpush1.bf16.msra.mxu0 %v2896_v25  ;;  %v2977_v24 = vld [vmem:[#allocation11 + $0x20] ss:$8 sps:$4 sm:$0xff]   ;;  %v2982_v25 = vld [vmem:[#allocation11 + $0x114] ss:$8 sps:$4 sm:$0xff]  }
  0xb8   : > { %2681 = vmatprep.mubr.msk.bf16.mxu0 %vm3595_vm6, %v2680_v26  ;;  %1238 = vmatprep.subr.bf16.mxu0 %v2901_v27  ;;  %v2985_v26 = vld [vmem:[#allocation11 + $0x14] ss:$8 sps:$4 sm:$0xff]   ;;  %v2980_v27 = vld [vmem:[#allocation11 + $0x110] ss:$8 sps:$4 sm:$0xff]  }
  0xb9   : > { %1994 = vmatpush1.bf16.msra.mxu1 %v2947_v3  ;;  %v3037_v3 = vld [vmem:[#allocation11 + $0x80] ss:$8 sps:$4 sm:$0xff]  }
  0xba   : > { %1995 = vmatprep.subr.bf16.mxu1 %v2955_v6 }
  0xbb   : > { %1239 = vmatpush1.bf16.msra.mxu0 %v2899_v29  ;;  %v2983_v29 = vld [vmem:[#allocation11 + $0x10] ss:$8 sps:$4 sm:$0xff]  }
  0xbc   : > { %1240 = vmatprep.subr.bf16.mxu0 %v2904_v30  ;;  %v2988_v30 = vld [vmem:[#allocation11 + $0x104] ss:$8 sps:$4 sm:$0xff]  }
  0xbd   : > { %1996 = vmatpush1.bf16.msra.mxu1 %v2953_v8 }
  0xbe   : > { %1997 = vmatprep.subr.bf16.mxu1 %v2961_v10  ;;  %v3612_v10 = vsub.s32 0, %v3550_v43 }
  0xbf   : > { %1241 = vmatpush1.bf16.msra.mxu0 %v2902_v31  ;;  %v2991_v31 = vld [vmem:[#allocation11 + $0x4] ss:$8 sps:$4 sm:$0xff]  }
  0xc0   : > { %1242 = vmatprep.subr.bf16.mxu0 %v2907_v32  ;;  %v2986_v32 = vld [vmem:[#allocation11 + $0x100] ss:$8 sps:$4 sm:$0xff]  }
  0xc1   : > { %1998 = vmatpush1.bf16.msra.mxu1 %v2959_v12 }
  0xc2   : > { %1999 = vmatprep.subr.bf16.mxu1 %v2967_v14 }
  0xc3   : > { %1243 = vmatpush1.bf16.msra.mxu0 %v2905_v33  ;;  %v2989_v33 = vld [vmem:[#allocation11] ss:$8 sps:$4 sm:$0xff]  }
  0xc4   : > { %1244 = vmatprep.subr.bf16.mxu0 %v2910_v34  ;;  %v2994_v34 = vld [vmem:[#allocation11 + $0x1f4] ss:$8 sps:$4 sm:$0xff]  }
  0xc5   : > { %2000 = vmatpush1.bf16.msra.mxu1 %v2965_v16 }
  0xc6   : > { %2001 = vmatprep.subr.bf16.mxu1 %v2973_v18 }
  0xc7   : > { %1245 = vmatpush1.bf16.msra.mxu0 %v2908_v35  ;;  %v2997_v35 = vld [vmem:[#allocation11 + $0xf4] ss:$8 sps:$4 sm:$0xff]  }
  0xc8   : > { %1246 = vmatprep.subr.bf16.mxu0 %v2913_v36  ;;  %v2992_v36 = vld [vmem:[#allocation11 + $0x1f0] ss:$8 sps:$4 sm:$0xff]  }
  0xc9   : > { %2002 = vmatpush1.bf16.msra.mxu1 %v2971_v20  ;;  %v1299_v20 = vld [vmem:[#allocation9] sm:$0x3] }
  0xca   : > { %2003 = vmatprep.subr.bf16.mxu1 %v2979_v22 }
  0xcb   : > { %1247 = vmatpush1.bf16.msra.mxu0 %v2911_v37  ;;  %v2995_v37 = vld [vmem:[#allocation11 + $0xf0] ss:$8 sps:$4 sm:$0xff]  }
  0xcc   : > { %1248 = vmatprep.subr.bf16.mxu0 %v2916_v38  ;;  %v3000_v38 = vld [vmem:[#allocation11 + $0x1e4] ss:$8 sps:$4 sm:$0xff]  }
  0xcd   : > { %2004 = vmatpush1.bf16.msra.mxu1 %v2977_v24 }
  0xce   : > { %2005 = vmatprep.subr.bf16.mxu1 %v2985_v26 }
  0xcf   : > { %1249 = vmatpush1.bf16.msra.mxu0 %v2914_v39  ;;  %v3003_v39 = vld [vmem:[#allocation11 + $0xe4] ss:$8 sps:$4 sm:$0xff]  }
  0xd0   : > { %1250 = vmatprep.subr.bf16.mxu0 %v2919_v40  ;;  %v2998_v40 = vld [vmem:[#allocation11 + $0x1e0] ss:$8 sps:$4 sm:$0xff]  }
  0xd1   : > { %2006 = vmatpush1.bf16.msra.mxu1 %v2983_v29 }
  0xd2   : > { %2007 = vmatprep.subr.bf16.mxu1 %v2991_v31 }
  0xd3   : > { %1251 = vmatpush1.bf16.msra.mxu0 %v2917_v41  ;;  %v3001_v41 = vld [vmem:[#allocation11 + $0xe0] ss:$8 sps:$4 sm:$0xff]  }
  0xd4   : > { %1252 = vmatprep.subr.bf16.mxu0 %v2922_v42  ;;  %v3006_v42 = vld [vmem:[#allocation11 + $0x1d4] ss:$8 sps:$4 sm:$0xff]  }
  0xd5   : > { %2008 = vmatpush1.bf16.msra.mxu1 %v2989_v33 }
  0xd6   : > { %2009 = vmatprep.subr.bf16.mxu1 %v2997_v35 }
  0xd7   : > { %1253 = vmatpush2.bf16.msra.mxu0 %v2920_v44  ;;  %v3009_v44 = vld [vmem:[#allocation11 + $0xd4] ss:$8 sps:$4 sm:$0xff]  }
  0xd8   : > { %1254 = vmatprep.subr.bf16.mxu0 %v2925_v45  ;;  %v3004_v45 = vld [vmem:[#allocation11 + $0x1d0] ss:$8 sps:$4 sm:$0xff]  }
  0xd9   : > { %2010 = vmatpush2.bf16.msra.mxu1 %v2995_v37 }
  0xda   : > { %2011 = vmatprep.subr.bf16.mxu1 %v3003_v39 }
  0xdb   : > { %1255 = vmatpush2.bf16.msra.mxu0 %v2923_v46  ;;  %v3007_v46 = vld [vmem:[#allocation11 + $0xd0] ss:$8 sps:$4 sm:$0xff]  }
  0xdc   : > { %1256 = vmatprep.subr.bf16.mxu0 %v2928_v47  ;;  %v3012_v47 = vld [vmem:[#allocation11 + $0x1c4] ss:$8 sps:$4 sm:$0xff]  }
  0xdd   : > { %2012 = vmatpush2.bf16.msra.mxu1 %v3001_v41 }
  0xde   : > { %2013 = vmatprep.subr.bf16.mxu1 %v3009_v44 }
  0xdf   : > { %1257 = vmatpush2.bf16.msra.mxu0 %v2926_v48  ;;  %v3010_v48 = vld [vmem:[#allocation11 + $0x1c0] ss:$8 sps:$4 sm:$0xff]  }
  0xe0   : > { %1258 = vmatprep.subr.bf16.mxu0 %v2931_v49  ;;  %v3015_v49 = vld [vmem:[#allocation11 + $0xc4] ss:$8 sps:$4 sm:$0xff]  }
  0xe1   : > { %2014 = vmatpush2.bf16.msra.mxu1 %v3007_v46 }
  0xe2   : > { %2015 = vmatprep.subr.bf16.mxu1 %v3015_v49 }
  0xe3   : > { %1259 = vmatpush2.bf16.msra.mxu0 %v2929_v50  ;;  %v3013_v50 = vld [vmem:[#allocation11 + $0xc0] ss:$8 sps:$4 sm:$0xff]  }
  0xe4   : > { %1260 = vmatprep.subr.bf16.mxu0 %v2934_v51  ;;  %v3018_v51 = vld [vmem:[#allocation11 + $0x1b4] ss:$8 sps:$4 sm:$0xff]  }
  0xe5   : > { %2016 = vmatpush2.bf16.msra.mxu1 %v3013_v50 }
  0xe7   : > { %1261 = vmatpush2.bf16.msra.mxu0 %v2932_v52  ;;  %v3016_v52 = vld [vmem:[#allocation11 + $0x1b0] ss:$8 sps:$4 sm:$0xff]  }
  0xe8   : > { %1262 = vmatprep.subr.bf16.mxu0 %v2937_v53  ;;  %v3021_v53 = vld [vmem:[#allocation11 + $0xb4] ss:$8 sps:$4 sm:$0xff]  }
  0xe9   : > { %2017 = vmatprep.subr.bf16.mxu1 %v3021_v53 }
  0xeb   : > { %1263 = vmatpush2.bf16.msra.mxu0 %v2935_v54  ;;  %v3019_v54 = vld [vmem:[#allocation11 + $0xb0] ss:$8 sps:$4 sm:$0xff]  }
  0xec   : > { %1264 = vmatprep.subr.bf16.mxu0 %v2940_v55  ;;  %2018 = vmatpush2.bf16.msra.mxu1 %v3019_v54  ;;  %v3024_v55 = vld [vmem:[#allocation11 + $0x1a4] ss:$8 sps:$4 sm:$0xff]  }
  0xed   : > { %2019 = vmatprep.subr.bf16.mxu1 %v3027_v57 }
  0xef   : > { %1265 = vmatpush2.bf16.msra.mxu0 %v2938_v56  ;;  %v3022_v56 = vld [vmem:[#allocation11 + $0x1a0] ss:$8 sps:$4 sm:$0xff]  }
  0xf0   : > { %1266 = vmatprep.subr.bf16.mxu0 %v2943_v60  ;;  %v3030_v60 = vld [vmem:[#allocation11 + $0x194] ss:$8 sps:$4 sm:$0xff]   ;;  %2020 = vmatpush2.bf16.msra.mxu1 %v3025_v58 }
  0xf1   : > { %2021 = vmatprep.subr.bf16.mxu1 %v3033_v62 }
  0xf3   : > { %1267 = vmatpush2.bf16.msra.mxu0 %v2941_v61  ;;  %v3028_v61 = vld [vmem:[#allocation11 + $0x190] ss:$8 sps:$4 sm:$0xff]  }
  0xf4   : > { %2036 = vmatprep.subr.bf16.mxu0 %v2946_v2  ;;  %2022 = vmatpush2.bf16.msra.mxu1 %v3031_v63  ;;  %v3039_v2 = vld [vmem:[#allocation11 + $0x84] ss:$8 sps:$4 sm:$0xff]  }
  0xf5   : > { %2023 = vmatprep.subr.bf16.mxu1 %v3039_v2 }
  0xf6   : > { %2684 = vmatmul.mubr.msk.bf16.vlgmr.msra.gmra.mxu0 %vm3595_vm6, %v2683_v0  ;;  %v3036_v0 = vld [vmem:[#allocation11 + $0x184] ss:$8 sps:$4 sm:$0xff]  }
  0xf7   : > { %2037 = vmatpush1.bf16.msra.mxu0 %v2944_v1  ;;  %v3034_v1 = vld [vmem:[#allocation11 + $0x180] ss:$8 sps:$4 sm:$0xff]  }
  0xf8   : > { %2038 = vmatprep.subr.bf16.mxu0 %v2952_v5  ;;  %2024 = vmatpush2.bf16.msra.mxu1 %v3037_v3 }
  0xf9   : > { %2079 = vmatprep.subr.bf16.mxu1 %v3042_v4  ;;  %v3040_v4 = vld [vmem:[#allocation11 + $0x270] ss:$8 sps:$4 sm:$0xff]  }
  0xfb   : > { %2039 = vmatpush1.bf16.msra.mxu0 %v2950_v7 }
  0xfc   : > { %2040 = vmatprep.subr.bf16.mxu0 %v2958_v9 }
  0xff   : > { %2041 = vmatpush1.bf16.msra.mxu0 %v2956_v11 }
 0x100   : > { %2042 = vmatprep.subr.bf16.mxu0 %v2964_v13  ;;  %v1283_v13 = vld [vmem:[#allocation8] sm:$0x3] }
 0x103   : > { %2043 = vmatpush1.bf16.msra.mxu0 %v2962_v15  ;;  %v3615_v15 = vsub.s32 1, %v3550_v43 }
 0x104   : > { %2044 = vmatprep.subr.bf16.mxu0 %v2970_v17 }
 0x105   : > { %v1292_v26 = vrot.slane %v1283_v13, %v3615_v15 }
 0x107   : > { %2045 = vmatpush1.bf16.msra.mxu0 %v2968_v19  ;;  %v1288_v19 = vrot.slane %v1283_v13, %v3612_v10  ;;  %v3049_v13 = vld [vmem:[#allocation11 + $0x240] ss:$8 sps:$4 sm:$0xff]  }
 0x108   : > { %2046 = vmatprep.subr.bf16.mxu0 %v2976_v21 }
 0x10b   : > { %2047 = vmatpush1.bf16.msra.mxu0 %v2974_v23 }
 0x10c   : > { %2048 = vmatprep.subr.bf16.mxu0 %v2982_v25 }
 0x10f   : > { %2049 = vmatpush1.bf16.msra.mxu0 %v2980_v27  ;;  %v1304_v27 = vrot.slane %v1299_v20, %v3612_v10 }
 0x110   : > { %2050 = vmatprep.subr.bf16.mxu0 %v2988_v30 }
 0x113   : > { %2051 = vmatpush1.bf16.msra.mxu0 %v2986_v32 }
 0x114   : > { %2052 = vmatprep.subr.bf16.mxu0 %v2994_v34 }
 0x117   : > { %2053 = vmatpush2.bf16.msra.mxu0 %v2992_v36  ;;  %v1308_v36 = vrot.slane %v1299_v20, %v3615_v15  ;;  %v3063_v20 = vld [vmem:[#allocation11 + $0x204] ss:$8 sps:$4 sm:$0xff]  }
 0x118   : > { %2054 = vmatprep.subr.bf16.mxu0 %v3000_v38 }
 0x11b   : > { %2055 = vmatpush2.bf16.msra.mxu0 %v2998_v40 }
 0x11c   : > { %2056 = vmatprep.subr.bf16.mxu0 %v3006_v42 }
 0x11f   : > { %2057 = vmatpush2.bf16.msra.mxu0 %v3004_v45 }
 0x120   : > { %2058 = vmatprep.subr.bf16.mxu0 %v3012_v47 }
 0x123   : > { %2059 = vmatpush2.bf16.msra.mxu0 %v3010_v48 }
 0x124   : > { %2060 = vmatprep.subr.bf16.mxu0 %v3018_v51 }
 0x127   : > { %2061 = vmatpush2.bf16.msra.mxu0 %v3016_v52 }
 0x128   : > { %2062 = vmatprep.subr.bf16.mxu0 %v3024_v55 }
 0x12b   : > { %2063 = vmatpush2.bf16.msra.mxu0 %v3022_v56 }
 0x12c   : > { %2064 = vmatprep.subr.bf16.mxu0 %v3030_v60 }
 0x12f   : > { %2065 = vmatpush2.bf16.msra.mxu0 %v3028_v61 }
 0x130   : > { %2066 = vmatprep.subr.bf16.mxu0 %v3036_v0 }
 0x133   : > { %2067 = vmatpush2.bf16.msra.mxu0 %v3034_v1 }
 0x176   : > { %v1184_v5 = vpop.f32.mrf.mxu0 }
 0x177   : > { %v1227_v6 = vpop.f32.mrf.mxu1 }
 0x178   : > { %v1186_v7 = vpop.f32.mrf.mxu0  ;;  %v1228_v14 = vadd.f32 %v1227_v6, %v1184_v5  ;;  %v3045_v6 = vld [vmem:[#allocation11 + $0x264] ss:$8 sps:$4 sm:$0xff]  }
 0x179   : > { %v1229_v8 = vpop.f32.mrf.mxu1 }
 0x17a   : > { %v1188_v9 = vpop.f32.mrf.mxu0  ;;  %v1230_v17 = vadd.f32 %v1229_v8, %v1186_v7  ;;  %v3043_v8 = vld [vmem:[#allocation11 + $0x260] ss:$8 sps:$4 sm:$0xff]  }
 0x17b   : > { %v1231_v11 = vpop.f32.mrf.mxu1 }
 0x17c   : > { %v1190_v12 = vpop.f32.mrf.mxu0  ;;  %v1232_v23 = vadd.f32 %v1231_v11, %v1188_v9  ;;  %v3048_v9 = vld [vmem:[#allocation11 + $0x254] ss:$8 sps:$4 sm:$0xff]   ;;  %v3046_v11 = vld [vmem:[#allocation11 + $0x250] ss:$8 sps:$4 sm:$0xff]  }
 0x17d   : > { %v1233_v21 = vpop.f32.mrf.mxu1 }
 0x17e   : > { %v1234_v30 = vadd.f32 %v1233_v21, %v1190_v12  ;;  %v3051_v12 = vld [vmem:[#allocation11 + $0x244] ss:$8 sps:$4 sm:$0xff]   ;;  %v3061_v21 = vld [vmem:[#allocation11 + $0x200] ss:$8 sps:$4 sm:$0xff]  }
 0x1b6   : > { %v1270_v16 = vpop.f32.mrf.mxu0 }
 0x1b7   : > { %v1271_v18 = vadd.f32 %v1270_v16, %v1228_v14  ;;  %v3054_v14 = vld [vmem:[#allocation11 + $0x234] ss:$8 sps:$4 sm:$0xff]   ;;  %v3052_v16 = vld [vmem:[#allocation11 + $0x230] ss:$8 sps:$4 sm:$0xff]  }
 0x1b8   : > { %v1272_v22 = vpop.f32.mrf.mxu0 }
 0x1b9   : > { %v1279_v24 = vmax.f32 %v1271_v18, 0.0  ;;  %v1273_v25 = vadd.f32 %v1272_v22, %v1230_v17  ;;  %v3055_v17 = vld [vmem:[#allocation11 + $0x220] ss:$8 sps:$4 sm:$0xff]   ;;  %v3060_v18 = vld [vmem:[#allocation11 + $0x214] ss:$8 sps:$4 sm:$0xff]  }
 0x1ba   : > { %v1274_v29 = vpop.f32.mrf.mxu0  ;;  %v3066_v22 = vld [vmem:[#allocation11 + $0x2f4] ss:$8 sps:$4 sm:$0xff]  }
 0x1bb   : > { %v1295_v31 = vmul.f32 %v1288_v19, %v1279_v24  ;;  %v1280_v32 = vmax.f32 %v1273_v25, 0.0  ;;  %v1275_v33 = vadd.f32 %v1274_v29, %v1232_v23  ;;  %v3064_v23 = vld [vmem:[#allocation11 + $0x2f0] ss:$8 sps:$4 sm:$0xff]   ;;  %v3069_v24 = vld [vmem:[#allocation11 + $0x2e4] ss:$8 sps:$4 sm:$0xff]  }
 0x1bc   : > { %v1276_v34 = vpop.f32.mrf.mxu0  ;;  %v3067_v25 = vld [vmem:[#allocation11 + $0x2e0] ss:$8 sps:$4 sm:$0xff]   ;;  %v3075_v29 = vld [vmem:[#allocation11 + $0x2c4] ss:$8 sps:$4 sm:$0xff]  }
 0x1bd   : > { %v1296_v35 = vmul.f32 %v1292_v26, %v1280_v32  ;;  %v1281_v37 = vmax.f32 %v1275_v33, 0.0  ;;  %v1277_v38 = vadd.f32 %v1276_v34, %v1234_v30  ;;  %v1311_v39 = vadd.f32 %v1304_v27, %v1295_v31  ;;  %v3073_v30 = vld [vmem:[#allocation11 + $0x2c0] ss:$8 sps:$4 sm:$0xff]   ;;  %v3078_v31 = vld [vmem:[#allocation11 + $0x2b4] ss:$8 sps:$4 sm:$0xff]  }
 0x1be   : > { %v3076_v32 = vld [vmem:[#allocation11 + $0x2b0] ss:$8 sps:$4 sm:$0xff]   ;;  %v3081_v33 = vld [vmem:[#allocation11 + $0x2a4] ss:$8 sps:$4 sm:$0xff]   ;;  %v3079_v34 = vld [vmem:[#allocation11 + $0x2a0] ss:$8 sps:$4 sm:$0xff]  }
 0x1bf   : > { %v1297_v40 = vmul.f32 %v1288_v19, %v1281_v37  ;;  %v1282_v41 = vmax.f32 %v1277_v38, 0.0  ;;  %v1312_v42 = vadd.f32 %v1308_v36, %v1296_v35  ;;  %v1327_v46 = vrot.slane %v1311_v39, 1  ;;  %v3058_v19 = vld [vmem:[#allocation11 + $0x210] ss:$8 sps:$4 sm:$0xff]   ;;  %v3084_v35 = vld [vmem:[#allocation11 + $0x294] ss:$8 sps:$4 sm:$0xff]  }
 0x1c0   : > { %v1315_v50 = vrot.slane %v1311_v39, 7  ;;  %v3087_v37 = vld [vmem:[#allocation11 + $0x284] ss:$8 sps:$4 sm:$0xff]   ;;  %v3085_v38 = vld [vmem:[#allocation11 + $0x280] ss:$8 sps:$4 sm:$0xff]  }
 0x1c1   : > { %v1313_v44 = vadd.f32 %v1304_v27, %v1297_v40  ;;  %v1298_v45 = vmul.f32 %v1292_v26, %v1282_v41  ;;  %v1316_v51 = vrot.slane %v1312_v42, 7  ;;  %v1328_v54 = vrot.slane %v1312_v42, 1  ;;  %v3072_v26 = vld [vmem:[#allocation11 + $0x2d4] ss:$8 sps:$4 sm:$0xff]   ;;  %v3070_v27 = vld [vmem:[#allocation11 + $0x2d0] ss:$8 sps:$4 sm:$0xff]  }
 0x1c3   : > { %v1317_v47 = vrot.slane %v1313_v44, 7  ;;  %v1329_v48 = vrot.slane %v1313_v44, 1  ;;  %v1314_v49 = vadd.f32 %v1308_v36, %v1298_v45  ;;  %v2687_v58 = vpack.c.bf16 %v1313_v44, %v1311_v39  ;;  %v3082_v36 = vld [vmem:[#allocation11 + $0x290] ss:$8 sps:$4 sm:$0xff]  }
 0x1c5   : > { %v3623_v52 = vsel %vm487_vm4, %v1327_v46, %v1329_v48  ;;  %v3627_v53 = vsel %vm487_vm4, %v1329_v48, %v1327_v46  ;;  %v1318_v55 = vrot.slane %v1314_v49, 7  ;;  %v1330_v56 = vrot.slane %v1314_v49, 1  ;;  %v2122_v46 = vld [vmem:[%s3761_s5] sm:$0x3] }
 0x1c6   : > { %v2688_v57 = vpack.c.bf16 %v1314_v49, %v1312_v42  ;;  %v1319_v60 = vsel %vm472_vm1, %v1315_v50, %v1317_v47  ;;  %v1321_v61 = vsel %vm472_vm1, %v1317_v47, %v1315_v50  ;;  %v2701_v62 = vpack.c.bf16 %v3627_v53, %v3623_v52 }
 0x1c7   : > { %v1320_v63 = vsel %vm472_vm1, %v1316_v51, %v1318_v55  ;;  %v1322_v0 = vsel %vm472_vm1, %v1318_v55, %v1316_v51  ;;  %v1332_v1 = vsel %vm487_vm4, %v1328_v54, %v1330_v56  ;;  %v1334_v2 = vsel %vm487_vm4, %v1330_v56, %v1328_v54 }
 0x1c8   : > { %2068 = vmatprep.mubr.bf16.mxu0 %v2688_v57  ;;  %v2692_v3 = vpack.c.bf16 %v1320_v63, %v1322_v0  ;;  %v2695_v5 = vpack.c.bf16 %v1319_v60, %v1321_v61  ;;  %v2698_v7 = vpack.c.bf16 %v1334_v2, %v1332_v1  ;;  %v2127_v52 = vrot.slane %v2122_v46, %v3612_v10 }
 0x1c9   : > { %2069 = vmatmul.mubr.bf16.vlgmr.msra.gmra.mxu0 %v2687_v58  ;;  %v2131_v56 = vrot.slane %v2122_v46, %v3615_v15  ;;  %v2147_v2 = vrot.slane %v2138_v28, %v3615_v15  ;;  %v2645_v46 = vld.sshfl [vmem:[%s3765_s9] sm:$0x33 pattern:$0x76325410] }
 0x1ca   : > { %2693 = vmatprep.mubr.msk.bf16.mxu1 %vm3567_vm3, %v2692_v3 }
 0x1cb   : > { %2696 = vmatmul.mubr.msk.bf16.vlgmr.msra.gmra.mxu1 %vm3567_vm3, %v2695_v5 }
 0x1cc   : > { %2080 = vmatpush1.bf16.msra.mxu1 %v3040_v4  ;;  %2699 = vmatprep.mubr.msk.bf16.mxu1 %vm3595_vm6, %v2698_v7 }
 0x1cd   : > { %2081 = vmatprep.subr.bf16.mxu1 %v3045_v6 }
 0x1d0   : > { %2082 = vmatpush1.bf16.msra.mxu1 %v3043_v8 }
 0x1d1   : > { %2083 = vmatprep.subr.bf16.mxu1 %v3048_v9 }
 0x1d4   : > { %2084 = vmatpush1.bf16.msra.mxu1 %v3046_v11 }
 0x1d5   : > { %2085 = vmatprep.subr.bf16.mxu1 %v3051_v12 }
 0x1d8   : > { %2086 = vmatpush1.bf16.msra.mxu1 %v3049_v13 }
 0x1d9   : > { %2087 = vmatprep.subr.bf16.mxu1 %v3054_v14 }
 0x1dc   : > { %2088 = vmatpush1.bf16.msra.mxu1 %v3052_v16 }
 0x1dd   : > { %2089 = vmatprep.subr.bf16.mxu1 %v3057_v59 }
 0x1e0   : > { %2090 = vmatpush1.bf16.msra.mxu1 %v3055_v17 }
 0x1e1   : > { %2091 = vmatprep.subr.bf16.mxu1 %v3060_v18 }
 0x1e4   : > { %2092 = vmatpush1.bf16.msra.mxu1 %v3058_v19 }
 0x1e5   : > { %2093 = vmatprep.subr.bf16.mxu1 %v3063_v20  ;;  %v3316_v20 = vmov 1983009808  }
 0x1e8   : > { %2094 = vmatpush1.bf16.msra.mxu1 %v3061_v21  ;;  %v2176_v21 = vunpack.c.l.s4 %v3316_v20 }
 0x1e9   : > { %2095 = vmatprep.subr.bf16.mxu1 %v3066_v22 }
 0x1ec   : > { %2096 = vmatpush2.bf16.msra.mxu1 %v3064_v23 }
 0x1ed   : > { %2097 = vmatprep.subr.bf16.mxu1 %v3069_v24 }
 0x1f0   : > { %2098 = vmatpush2.bf16.msra.mxu1 %v3067_v25 }
 0x1f1   : > { %2099 = vmatprep.subr.bf16.mxu1 %v3072_v26  ;;  %v2177_v26 = vunpack.c.0.s8 %v2176_v21 }
 0x1f4   : > { %2100 = vmatpush2.bf16.msra.mxu1 %v3070_v27 }
 0x1f5   : > { %2101 = vmatprep.subr.bf16.mxu1 %v3075_v29 }
 0x1f8   : > { %2102 = vmatpush2.bf16.msra.mxu1 %v3073_v30 }
 0x1f9   : > { %2103 = vmatprep.subr.bf16.mxu1 %v3078_v31  ;;  %v2180_v31 = vsub.s32 %v2177_v26, %v3550_v43  ;;  %v2201_v43 = vld [vmem:[%s3764_s8] sm:$0x3]  ;;  %v3097_v26 = vld [vmem:[%s3536_s29 + $0x10] sm:$0xff] }
 0x1fc   : > { %2104 = vmatpush2.bf16.msra.mxu1 %v3076_v32 }
 0x1fd   : > { %2105 = vmatprep.subr.bf16.mxu1 %v3081_v33  ;;  %v2171_v33 = vld [vmem:[%s3763_s7] sm:$0xf] }
 0x200   : > { %2106 = vmatpush2.bf16.msra.mxu1 %v3079_v34 }
 0x201   : > { %2107 = vmatprep.subr.bf16.mxu1 %v3084_v35 }
 0x204   : > { %2108 = vmatpush2.bf16.msra.mxu1 %v3082_v36 }
 0x205   : > { %2109 = vmatprep.subr.bf16.mxu1 %v3087_v37 }
 0x208   : > { %2110 = vmatpush2.bf16.msra.mxu1 %v3085_v38 }
 0x20b   : > { %2702 = vmatmul.mubr.msk.bf16.vlgmr.msra.gmra.mxu1 %vm3595_vm6, %v2701_v62  ;;  %v2143_v62 = vrot.slane %v2138_v28, %v3612_v10 }
 0x289   : > { %v2070_v41 = vpop.f32.mrf.mxu0 }
 0x28b   : > { %v2027_v39 = vpop.f32.mrf.mxu1  ;;  %v2072_v44 = vpop.f32.mrf.mxu0 }
 0x28c   : > { %v2071_v47 = vadd.f32 %v2070_v41, %v2027_v39  ;;  %v3317_v41 = vmov 0  }
 0x28d   : > { %v2029_v40 = vpop.f32.mrf.mxu1  ;;  %v2074_v48 = vpop.f32.mrf.mxu0  ;;  %2799 = vset.pattern.permute.xlu0 %v3317_v41 }
 0x28e   : > { %v2073_v50 = vadd.f32 %v2072_v44, %v2029_v40 }
 0x28f   : > { %v2031_v42 = vpop.f32.mrf.mxu1  ;;  %v2076_v57 = vpop.f32.mrf.mxu0 }
 0x290   : > { %v2075_v54 = vadd.f32 %v2074_v48, %v2031_v42 }
 0x291   : > { %v2033_v45 = vpop.f32.mrf.mxu1 }
 0x292   : > { %v2077_v60 = vadd.f32 %v2076_v57, %v2033_v45 }
 0x2cb   : > { %v2113_v49 = vpop.f32.mrf.mxu1 }
 0x2cc   : > { %v2114_v51 = vadd.f32 %v2113_v49, %v2071_v47  ;;  %v2218_v47 = vcombine.high %v2645_v46, %v2645_v46 }
 0x2cd   : > { %v2115_v53 = vpop.f32.mrf.mxu1 }
 0x2ce   : > { %v2116_v55 = vadd.f32 %v2115_v53, %v2073_v50  ;;  %v2134_v61 = vmul.f32 %v2127_v52, %v2114_v51 }
 0x2cf   : > { %v2117_v58 = vpop.f32.mrf.mxu1 }
 0x2d0   : > { %v2118_v63 = vadd.f32 %v2117_v58, %v2075_v54  ;;  %v2135_v1 = vmul.f32 %v2131_v56, %v2116_v55  ;;  %v3664_v5 = vadd.f32 %v2143_v62, %v2134_v61  ;;  %v2237_v58 = vld [vmem:[%s3766_s10] sm:$0x3] }
 0x2d1   : > { %v2119_v0 = vpop.f32.mrf.mxu1 }
 0x2d2   : > { %v2136_v3 = vmul.f32 %v2127_v52, %v2118_v63  ;;  %v2120_v4 = vadd.f32 %v2119_v0, %v2077_v60  ;;  %v3668_v8 = vadd.f32 %v2147_v2, %v2135_v1  ;;  %v2246_v63 = vrot.slane %v2237_v58, %v3615_v15 }
 0x2d4   : > { %v3666_v6 = vadd.f32 %v2143_v62, %v2136_v3  ;;  %v2137_v7 = vmul.f32 %v2131_v56, %v2120_v4  ;;  %v2242_v62 = vrot.slane %v2237_v58, %v3612_v10 }
 0x2d6   : > { %v2154_v9 = vadd.f32 %v3666_v6, %v3664_v5  ;;  %v3672_v11 = vadd.f32 %v2147_v2, %v2137_v7 }
 0x2d8   : > { %v2155_v12 = vrot.slane %v2154_v9, 4  ;;  %v2161_v13 = vadd.f32 %v3672_v11, %v3668_v8 }
 0x2da   : > { %v2156_v14 = vadd.f32 %v2155_v12, %v2154_v9  ;;  %v2162_v16 = vrot.slane %v2161_v13, 4 }
 0x2dc   : > { %v2157_v59 = vrot.slane %v2156_v14, 2  ;;  %v2163_v17 = vadd.f32 %v2162_v16, %v2161_v13 }
 0x2de   : > { %v2158_v18 = vadd.f32 %v2157_v59, %v2156_v14  ;;  %v2164_v19 = vrot.slane %v2163_v17, 2 }
 0x2e0   : > { %v2159_v22 = vrot.slane %v2158_v18, 1  ;;  %v2165_v23 = vadd.f32 %v2164_v19, %v2163_v17 }
 0x2e2   : > { %v2166_v24 = vrot.slane %v2165_v23, 1  ;;  %v2160_v25 = vadd.f32 %v2159_v22, %v2158_v18 }
 0x2e4   : > { %v2167_v27 = vadd.f32 %v2166_v24, %v2165_v23  ;;  %v2169_v29 = vmul.f32 0.0625, %v2160_v25  ;;  %v3096_v24 = vld [vmem:[%s3536_s29] sm:$0xff] }
 0x2e6   : > { %v2170_v30 = vmul.f32 0.0625, %v2167_v27 }
 0x2e8   : > { %v2174_v32 = vcombine.low %v2169_v29, %v2170_v30  ;;  %v3098_v29 = vld [vmem:[%s3536_s29 + $0x8] sm:$0xff] }
 0x2ea   : > { %v2181_v34 = vrot.slane %v2174_v32, %v2180_v31 }
 0x2ec   : > { %v2183_v35 = vmul.f32 %v2181_v34, %v2171_v33 }
 0x2ee   : > { %v2191_v36 = vrot.slane %v2183_v35, %v2180_v31 }
 0x2f0   : > { %v2192_v37 = vcombine.high %v2191_v36, %v2191_v36  ;;  %v2196_v38 = vsel %vm2195_vm7, %v2191_v36, 0.0 }
 0x2f2   : > { %v2197_v39 = vsel %vm2195_vm7, %v2192_v37, 0.0 }
 0x2f3   : > { %v2198_v40 = vadd.f32 %v2197_v39, %v2196_v38 }
 0x2f5   : > { %2199 = vadd.xlane.f32.xlu0 %v2198_v40 }
 0x37e   : > { %v2200_v42 = vpop.xlane.xlu0 %2199 }
 0x37f   : > { %v2202_v44 = vadd.f32 %v2201_v43, %v2200_v42 }
 0x381   : > { %v2203_v45 = vmax.f32 %v2202_v44, 0.0 }
 0x383   : > { %2207 = vperm.xlu0 %2799, %v2203_v45  }
 0x3fe   : > { %v2208_v48 = vpop.permute.xlu0 %2207 }
 0x3ff   : > { %v2221_v49 = vmul.f32 %v2645_v46, %v2208_v48  ;;  %v2222_v50 = vmul.f32 %v2218_v47, %v2208_v48 }
 0x401   : > { %v2223_v51 = vsel %vm2195_vm7, %v2221_v49, 0.0  ;;  %v2230_v52 = vsel %vm2195_vm7, %v2222_v50, 0.0 }
 0x402   : > { %v2224_v28 = vrot.slane %v2223_v51, 4  ;;  %v2231_v53 = vrot.slane %v2230_v52, 4 }
 0x404   : > { %v2225_v54 = vadd.f32 %v2224_v28, %v2223_v51  ;;  %v2232_v55 = vadd.f32 %v2231_v53, %v2230_v52 }
 0x406   : > { %v2226_v56 = vrot.slane %v2225_v54, 2  ;;  %v2233_v57 = vrot.slane %v2232_v55, 2 }
 0x408   : > { %v2227_v60 = vadd.f32 %v2226_v56, %v2225_v54  ;;  %v2234_v61 = vadd.f32 %v2233_v57, %v2232_v55 }
 0x40a   : > { %v2228_v0 = vrot.slane %v2227_v60, 1  ;;  %v2235_v1 = vrot.slane %v2234_v61, 1 }
 0x40c   : > { %v2229_v2 = vadd.f32 %v2228_v0, %v2227_v60  ;;  %v2236_v3 = vadd.f32 %v2235_v1, %v2234_v61 }
 0x40e   : > { %v2249_v4 = vadd.f32 %v2242_v62, %v2229_v2  ;;  %v2250_v7 = vadd.f32 %v2246_v63, %v2236_v3 }
 0x410   : > { %v2646_v9 = vmul.f32 -1.442695, %v2249_v4  ;;  %v2647_v12 = vmul.f32 -1.442695, %v2250_v7 }
 0x412   : > { %3088 = vpow2.f32 %v2646_v9 }
 0x413   : > { %3090 = vpow2.f32 %v2647_v12 }
 0x41f   : > { %v3089_v13 = vpop.eup %3088 }
 0x420   : > { %v3091_v14 = vpop.eup %3090  ;;  %v2257_v16 = vadd.f32 1.0, %v3089_v13 }
 0x421   : > { %v2258_v59 = vadd.f32 1.0, %v3091_v14 }
 0x422   : > { %3092 = vrcp.f32 %v2257_v16 }
 0x423   : > { %3094 = vrcp.f32 %v2258_v59 }
 0x42f   : > { %v3093_v15 = vpop.eup %3092 }
 0x430   : > { %v3095_v17 = vpop.eup %3094  ;;  %v2266_v18 = vrot.slane %v3093_v15, %v3612_v10 }
 0x431   : > { %v2270_v19 = vrot.slane %v3095_v17, %v3612_v10  ;;  %v3099_v10 = vld [vmem:[%s3536_s29 + $0x18] sm:$0xff]  ;;  %s3318_s29 = smov [#allocation12]  }
 0x432   : > { %v2271_v20 = vmul.f32 %v2266_v18, %v3664_v5  ;;  %v2273_v21 = vmul.f32 %v2266_v18, %v3666_v6  ;;  %s3236_s22 = sshll.u32 %s3318_s29, 4  ;;  %s3237_s22 = int_to_ptr.vmem [resolvable:$false] %s3236_s22 }
 0x433   : > { %v2272_v22 = vmul.f32 %v2270_v19, %v3668_v8  ;;  %v2274_v23 = vmul.f32 %v2270_v19, %v3672_v11  ;;  %s3238_s12 = scalar_lea.vmem %s3237_s22, 1024  ;;  %p3239_p5 = scmp.lt.s32.totalorder %s3713_s23, %s3237_s22 }
 0x434   : > { %v2275_v25 = vadd.f32 %v3096_v24, %v2271_v20  ;;  %v2277_v27 = vadd.f32 %v3097_v26, %v2273_v21  ;;  %p3240_p1 = scmp.lt.s32.totalorder %s3238_s12, %s3232_s30 }
 0x435   : > { %v2276_v30 = vadd.f32 %v3098_v29, %v2272_v22  ;;  %v2278_v5 = vadd.f32 %v3099_v10, %v2274_v23 }
 0x436   : > { %v2279_v31 = vmax.f32 %v2275_v25, 0.0  ;;  %v2281_v6 = vmax.f32 %v2277_v27, 0.0  ;;  %p3241_p2 = por %p3240_p1, %p3239_p5 }
 0x437   : > { %v2280_v8 = vmax.f32 %v2276_v30, 0.0  ;;  %v2282_v11 = vmax.f32 %v2278_v5, 0.0 }
 0x438   : > { %2283 = vst [vmem:[%s458_s2] sm:$0xff] %v2279_v31  ;;  %2285 = vst [vmem:[%s458_s2 + $0x10] sm:$0xff] %v2281_v6  ;;  %p3242_p6 = pnand %p3241_p2, %p3235_p0 }
 0x439   : > { %2284 = vst [vmem:[%s458_s2 + $0x8] sm:$0xff] %v2280_v8  ;;  %2286 = vst [vmem:[%s458_s2 + $0x18] sm:$0xff] %v2282_v11 }
 0x43a   : > { %3245 = shalt.err (!%p3242_p6)
}
 0x43b   : > { %s3246_s15 = scalar_lea.hbm %s3711_s28, 512  ;;  %s3250_s13 = scalar_lea.hbm %s3767_s11, 1024 }
 0x43c   : > { %p3247_p10 = scmp.ne.s32.totalorder %s3711_s28, %s3246_s15  ;;  %p3251_p11 = scmp.lt.s32.totalorder %s3711_s28, %s3767_s11 }
 0x43d   : > { %p3252_p4 = scmp.lt.s32.totalorder %s3250_s13, %s3246_s15 }
 0x43e   : > { %p3248_p8 = pnand %p3247_p10, %p3798_p9 }
 0x43f   : > { %p3253_p7 = por %p3252_p4, %p3251_p11 }
 0x440   : > { %p3249_p3 = pneg %p3248_p8 }
 0x442   : > { %p3254_p12 = pnand %p3253_p7, %p3249_p3 }
 0x444   : > { %3257 = shalt.err (!%p3254_p12)
}
 0x445   : > { %s3319_s25 = smov 256   ;;  %s3320_s14 = smov 16  }
 0x446   : > { %2721 = dma.vmem_to_hbm [thread:$0]  (%p3798_p9), %s3713_s23, 512, %s3711_s28, %s2288_s21, %s3319_s25, %s3319_s25, %s3320_s14  }
 0x447 PF: > { %s2316_s30 = sand.u32 1, %s3292_s17   ;;  %p3799_p13 = scmp.ne.s32.totalorder %s3777_s24, 0 }
 0x448   : > { %p3800_p0 = scmp.ge.s32.totalorder %s3304_s20, 2  ;;  %s2317_s29 = scalar_lea.sflag [#allocation5], %s2316_s30 }
 0x44a   : > { %p2741_p5 = pnand %p3800_p0, %p3799_p13 }
 0x44c   : > { %p2742_p1 = pneg %p2741_p5 }
 0x44e   : > { %3287 = dma.done.wait (%p2742_p1), %s2317_s29, 512  }
 0x44f   : > { %3289 = vsyncadd (%p2742_p1), %s2317_s29, 4294966784  ;;  %s3801_s22 = sld [smem:[#allocation17_spill]]  ;;  %p26_p2 = scmp.ge.s32.totalorder %s3475_s27, 4  }
 0x450   : > { %s3802_s17 = smov %s3296_s18  ;;  %s3803_s18 = smov %s3300_s19 }
 0x451   : > { %s3805_s20 = smov %s3475_s27  ;;  %28 = sbr.rel (!%p26_p2) target bundleno = 12 (0xc), region = 125 }
 0x455   : > { %s3804_s19 = smov %s3801_s22 }
 0x456   :  { %2322 = vsyncpa [#allocation4], 1 }
 0x457   :  { %2324 = vsyncpa [#allocation4 + $0x1], 1 }
 0x458   :  { %2325 = vsyncpa [#allocation7], 1 }
 0x459   :  { %2326 = vsyncpa [#allocation10], 1 }
 0x45a   :  { %2327 = vsyncpa [#allocation5], 1 }
 0x45b   :  { %2329 = vsyncpa [#allocation5 + $0x1], 1 }

</bundles_post_ra>
